<compile_context>
chip_gen: v7x
topology: tpu7x:2x2x1
jax: 0.10.0
libtpu: 0.0.40
codegen_flags: <defaults>
</compile_context>

<pallas_src>
import jax
import jax.numpy as jnp
from jax import lax
from jax.experimental import pallas as pl
from jax.experimental.pallas import tpu as pltpu


def bilstm_classifier_kernel(emb_ref, len_ref,
                             wih_f_ref, whh_f_ref, b_f_ref,
                             wih_b_ref, whh_b_ref, b_b_ref,
                             wlin_ref, blin_ref,
                             out_ref,
                             xpf_ref, xpb_ref):
    T, Bt, H4 = xpf_ref.shape
    H = H4 // 4

    # ---- Phase 1: one big MXU-friendly input projection per direction ------
    # (T*Bt, E) @ (E, 4H), bf16 operands / f32 accumulate, gate biases folded.
    x_all = emb_ref[...]                                   # (T*Bt, E) bf16
    pf = jnp.dot(x_all, wih_f_ref[...],
                 preferred_element_type=jnp.float32) + b_f_ref[...]
    pb = jnp.dot(x_all, wih_b_ref[...],
                 preferred_element_type=jnp.float32) + b_b_ref[...]
    # Reshape while still f32: Bt is a multiple of 8 sublanes, so this splits
    # exactly along (8,128) tile boundaries (no relayout). Then cast once:
    # bf16 scratch halves VMEM footprint and per-step load bytes.
    xpf_ref[...] = pf.reshape(T, Bt, H4).astype(jnp.bfloat16)
    xpb_ref[...] = pb.reshape(T, Bt, H4).astype(jnp.bfloat16)

    # Recurrent weights loaded once; live in vregs across the whole scan.
    whh_f = whh_f_ref[...]                                 # (H, 4H) bf16
    whh_b = whh_b_ref[...]

    # Packed-seq mask operand: broadcast ONCE (not per unrolled step).
    lengths_b = jnp.broadcast_to(len_ref[...], (Bt, H))    # (Bt, H) int32

    def cell(pre, h, c, whh):
        # pre = x @ Wih + (b_ih + b_hh) in bf16; recurrent term in f32.
        gates = pre.astype(jnp.float32) + jnp.dot(
            h.astype(jnp.bfloat16), whh, preferred_element_type=jnp.float32)
        # Gate order (i, f, o, g): sigmoid only on the contiguous first 3H
        # lanes, tanh only on the last H lanes (halves EUP elements/step at
        # production 4H; lane-contiguous slices -> no relayout).
        sig = jax.nn.sigmoid(gates[:, :3 * H])
        g = jnp.tanh(gates[:, 3 * H:])
        i = sig[:, 0 * H:1 * H]
        f = sig[:, 1 * H:2 * H]
        o = sig[:, 2 * H:3 * H]
        c_new = f * c + i * g
        h_new = o * jnp.tanh(c_new)
        return h_new, c_new

    def body(t, carry):
        hf, cf, hb, cb = carry
        # forward direction, time step t
        hf_new, cf_new = cell(xpf_ref[t], hf, cf, whh_f)
        mf = t < lengths_b                                 # packed-seq freeze
        hf = jnp.where(mf, hf_new, hf)
        cf = jnp.where(mf, cf_new, cf)
        # backward direction, time step T - 1 - t (independent -> ILP)
        tb = T - 1 - t
        hb_new, cb_new = cell(xpb_ref[tb], hb, cb, whh_b)
        mb = tb < lengths_b
        hb = jnp.where(mb, hb_new, hb)
        cb = jnp.where(mb, cb_new, cb)
        return hf, cf, hb, cb

    z = jnp.zeros((Bt, H), jnp.float32)
    hf, cf, hb, cb = lax.fori_loop(0, T, body, (z, z, z, z),
                                   unroll=min(T, 8))

    # Fused output head: [hf, hb] @ [wlin_f; wlin_b] + (b + b_back)
    hcat = jnp.concatenate([hf, hb], axis=-1)              # (Bt, 2H)
    logit = jnp.dot(hcat, wlin_ref[...],
                    preferred_element_type=jnp.float32) + blin_ref[...]
    out_ref[...] = jax.nn.sigmoid(logit)


def seq_classifier2_forward(word_idxs, lengths, params, *, b_tile=8):
    """word_idxs: (B, T) int32; lengths: (B,) int32 (descending, packed)."""
    B, T = word_idxs.shape
    E = params["embedding"].shape[1]
    H = params["whh_f"].shape[-1]
    H4 = 4 * H

    # Pad the batch to a multiple of the sublane height (8) so every vreg /
    # MXU row is full. Padded rows get length 0 -> their state stays frozen
    # at zero and their outputs are dropped.
    BB = ((B + b_tile - 1) // b_tile) * b_tile
    pad = BB - B
    word_idxs_p = jnp.pad(word_idxs, ((0, pad), (0, 0)))
    lengths_p = jnp.pad(lengths.astype(jnp.int32), ((0, pad),))
    nc = BB // b_tile

    # Gather embeddings and lay out one flat time-major (T*b_tile, E) slab per
    # batch chunk, so the kernel's Phase-1 matmul needs no in-kernel reshape.
    emb = jnp.take(params["embedding"], word_idxs_p, axis=0)       # (BB, T, E)
    emb_slab = (emb.reshape(nc, b_tile, T, E)
                   .transpose(0, 2, 1, 3)                          # (nc,T,Bt,E)
                   .reshape(nc, T * b_tile, E)
                   .astype(jnp.bfloat16))
    len_slab = lengths_p.reshape(nc, b_tile, 1)

    # Fuse the 4 gates into lane-dense (., 4H) operands in (i, f, o, g) order
    # (sigmoid gates contiguous). Params are stored in PyTorch order (i,f,g,o).
    fuse = lambda w: jnp.concatenate([w[0], w[1], w[3], w[2]], axis=-1)
    wih_f = fuse(params["wih_f"]).astype(jnp.bfloat16)   # (E, 4H)
    whh_f = fuse(params["whh_f"]).astype(jnp.bfloat16)   # (H, 4H)
    b_f   = fuse(params["b_f"])                          # (1, 4H) f32
    wih_b = fuse(params["wih_b"]).astype(jnp.bfloat16)
    whh_b = fuse(params["whh_b"]).astype(jnp.bfloat16)
    b_b   = fuse(params["b_b"])
    wlin  = jnp.concatenate([params["wlin_f"], params["wlin_b"]], axis=0)
    blin  = params["blin"]

    const = lambda c: (0, 0)   # weights: same (whole-array) block every step
    out = pl.pallas_call(
        bilstm_classifier_kernel,
        out_shape=jax.ShapeDtypeStruct((BB, 1), jnp.float32),
        grid=(nc,),
        in_specs=[
            pl.BlockSpec((None, T * b_tile, E), lambda c: (c, 0, 0)),
            pl.BlockSpec((None, b_tile, 1), lambda c: (c, 0, 0)),
            pl.BlockSpec((E, H4), const),
            pl.BlockSpec((H, H4), const),
            pl.BlockSpec((1, H4), const),
            pl.BlockSpec((E, H4), const),
            pl.BlockSpec((H, H4), const),
            pl.BlockSpec((1, H4), const),
            pl.BlockSpec((2 * H, 1), const),
            pl.BlockSpec((1, 1), const),
        ],
        out_specs=pl.BlockSpec((b_tile, 1), lambda c: (c, 0)),
        scratch_shapes=[pltpu.VMEM((T, b_tile, H4), jnp.bfloat16),
                        pltpu.VMEM((T, b_tile, H4), jnp.bfloat16)],
        compiler_params=pltpu.CompilerParams(
            dimension_semantics=("parallel",),       # batch chunks -> 2 TCs on v7x
            vmem_limit_bytes=32 * 1024 * 1024),
    )(emb_slab, len_slab,
      wih_f, whh_f, b_f,
      wih_b, whh_b, b_b,
      wlin, blin)
    return out[:B, 0]


def reference_forward(word_idxs, lengths, params):
    """Pure-JAX f32 reference with identical packed-LSTM semantics."""
    emb = jnp.take(params["embedding"], word_idxs, axis=0)   # (B, T, E)
    B, T, _ = emb.shape
    H = params["whh_f"].shape[-1]

    def run_dir(wih, whh, b, reverse):
        h = jnp.zeros((B, H), jnp.float32)
        c = jnp.zeros((B, H), jnp.float32)
        ts = range(T - 1, -1, -1) if reverse else range(T)
        for t in ts:
            x = emb[:, t, :]
            g0 = x @ wih[0] + h @ whh[0] + b[0]
            g1 = x @ wih[1] + h @ whh[1] + b[1]
            g2 = x @ wih[2] + h @ whh[2] + b[2]
            g3 = x @ wih[3] + h @ whh[3] + b[3]
            i, f = jax.nn.sigmoid(g0), jax.nn.sigmoid(g1)
            g, o = jnp.tanh(g2), jax.nn.sigmoid(g3)
            c_new = f * c + i * g
            h_new = o * jnp.tanh(c_new)
            mask = (t < lengths)[:, None]
            h = jnp.where(mask, h_new, h)
            c = jnp.where(mask, c_new, c)
        return h

    hf = run_dir(params["wih_f"], params["whh_f"], params["b_f"], False)
    hb = run_dir(params["wih_b"], params["whh_b"], params["b_b"], True)
    logit = hf @ params["wlin_f"] + hb @ params["wlin_b"] + params["blin"]
    return jax.nn.sigmoid(logit)[:, 0]


def make_params(key, vocab_size, embed_size, h_size):
    # TODO(synk): pretrained GloVe embedding load is file I/O, replaced by
    # deterministic random init (same shapes as nn.Embedding weight).
    ks = jax.random.split(key, 10)
    V, E, H = vocab_size, embed_size, h_size
    n = lambda k, shape, s: (jax.random.normal(k, shape, jnp.float32) * s)
    return {
        "embedding": n(ks[0], (V, E), 0.5),
        # LSTM weights, PyTorch gate order (i, f, g, o), already transposed
        # for right-multiplication: (4, in_dim, H)
        "wih_f": n(ks[1], (4, E, H), 0.2),
        "whh_f": n(ks[2], (4, H, H), 0.2),
        "b_f":   n(ks[3], (4, 1, H), 0.1),   # b_ih + b_hh folded together
        "wih_b": n(ks[4], (4, E, H), 0.2),
        "whh_b": n(ks[5], (4, H, H), 0.2),
        "b_b":   n(ks[6], (4, 1, H), 0.1),
        # linear / linear_back: (H, 1); biases folded into one (1, 1)
        "wlin_f": n(ks[7], (H, 1), 0.2),
        "wlin_b": n(ks[8], (H, 1), 0.2),
        "blin":   n(ks[9], (1, 1), 0.1),
    }


if __name__ == "__main__":
    V, E, H = 50, 32, 32        # vocab, embed_size, h_size
    B, T = 4, 8                 # batch, max sequence length

    key = jax.random.PRNGKey(0)
    k_params, k_idx = jax.random.split(key)
    params = make_params(k_params, V, E, H)

    word_idxs = jax.random.randint(k_idx, (B, T), 0, V, dtype=jnp.int32)
    lengths = jnp.array([8, 6, 5, 3], dtype=jnp.int32)   # descending (packed)

    out = seq_classifier2_forward(word_idxs, lengths, params)
    out = jax.block_until_ready(out)

    ref = reference_forward(word_idxs, lengths, params)
    assert out.shape == (B,)
    assert jnp.allclose(out, ref, rtol=2e-2, atol=2e-2), (out, ref)

    print("KERNEL_OK")
</pallas_src>

<mosaic_0001>
module attributes {stable_mosaic.version = 11 : i64} {
  func.func @bilstm_classifier_kernel(%arg0: i32, %arg1: memref<1x64x32xbf16, #tpu.memory_space<vmem>>, %arg2: memref<1x8x1xi32, #tpu.memory_space<vmem>>, %arg3: memref<32x128xbf16, #tpu.memory_space<vmem>>, %arg4: memref<32x128xbf16, #tpu.memory_space<vmem>>, %arg5: memref<1x128xf32, #tpu.memory_space<vmem>>, %arg6: memref<32x128xbf16, #tpu.memory_space<vmem>>, %arg7: memref<32x128xbf16, #tpu.memory_space<vmem>>, %arg8: memref<1x128xf32, #tpu.memory_space<vmem>>, %arg9: memref<64x1xf32, #tpu.memory_space<vmem>>, %arg10: memref<1x1xf32, #tpu.memory_space<vmem>>, %arg11: memref<8x1xf32, #tpu.memory_space<vmem>>, %arg12: memref<8x8x128xbf16, #tpu.memory_space<vmem>>, %arg13: memref<8x8x128xbf16, #tpu.memory_space<vmem>>) attributes {dimension_semantics = [#tpu.dimension_semantics<parallel>], iteration_bounds = array<i64: 1>, scalar_prefetch = 0 : i64, scratch_operands = 2 : i64, tpu.core_type = #tpu.core_type<tc>, window_params = [{transform_indices = @transform_0, window_bounds = array<i64: 1, 64, 32>}, {transform_indices = @transform_1, window_bounds = array<i64: 1, 8, 1>}, {pipeline_mode = #tpu.pipeline_mode<synchronous>, transform_indices = @transform_2, window_bounds = array<i64: 32, 128>}, {pipeline_mode = #tpu.pipeline_mode<synchronous>, transform_indices = @transform_3, window_bounds = array<i64: 32, 128>}, {pipeline_mode = #tpu.pipeline_mode<synchronous>, transform_indices = @transform_4, window_bounds = array<i64: 1, 128>}, {pipeline_mode = #tpu.pipeline_mode<synchronous>, transform_indices = @transform_5, window_bounds = array<i64: 32, 128>}, {pipeline_mode = #tpu.pipeline_mode<synchronous>, transform_indices = @transform_6, window_bounds = array<i64: 32, 128>}, {pipeline_mode = #tpu.pipeline_mode<synchronous>, transform_indices = @transform_7, window_bounds = array<i64: 1, 128>}, {pipeline_mode = #tpu.pipeline_mode<synchronous>, transform_indices = @transform_8, window_bounds = array<i64: 64, 1>}, {pipeline_mode = #tpu.pipeline_mode<synchronous>, transform_indices = @transform_9, window_bounds = array<i64: 1, 1>}, {transform_indices = @transform_10, window_bounds = array<i64: 8, 1>}]} {
    %c0 = arith.constant 0 : index
    %c0_0 = arith.constant 0 : index
    %c0_1 = arith.constant 0 : index
    %0 = vector.load %arg1[%c0, %c0_0, %c0_1] : memref<1x64x32xbf16, #tpu.memory_space<vmem>>, vector<1x64x32xbf16>
    %1 = vector.shape_cast %0 : vector<1x64x32xbf16> to vector<64x32xbf16>
    %c0_2 = arith.constant 0 : index
    %c0_3 = arith.constant 0 : index
    %2 = vector.load %arg3[%c0_2, %c0_3] : memref<32x128xbf16, #tpu.memory_space<vmem>>, vector<32x128xbf16>
    %cst = arith.constant dense<0.000000e+00> : vector<64x128xf32>
    %3 = tpu.matmul %1, %2, %cst {dimension_numbers = #tpu.dot_dimension_numbers<[1], [0], [0], [1], [0, 0, 1, 1], [], []>} : vector<64x32xbf16>, vector<32x128xbf16>, vector<64x128xf32> -> vector<64x128xf32>
    %c0_4 = arith.constant 0 : index
    %c0_5 = arith.constant 0 : index
    %4 = vector.load %arg5[%c0_4, %c0_5] : memref<1x128xf32, #tpu.memory_space<vmem>>, vector<1x128xf32>
    %5 = vector.broadcast %4 : vector<1x128xf32> to vector<64x128xf32>
    %6 = arith.addf %3, %5 : vector<64x128xf32>
    %c0_6 = arith.constant 0 : index
    %c0_7 = arith.constant 0 : index
    %7 = vector.load %arg6[%c0_6, %c0_7] : memref<32x128xbf16, #tpu.memory_space<vmem>>, vector<32x128xbf16>
    %cst_8 = arith.constant dense<0.000000e+00> : vector<64x128xf32>
    %8 = tpu.matmul %1, %7, %cst_8 {dimension_numbers = #tpu.dot_dimension_numbers<[1], [0], [0], [1], [0, 0, 1, 1], [], []>} : vector<64x32xbf16>, vector<32x128xbf16>, vector<64x128xf32> -> vector<64x128xf32>
    %c0_9 = arith.constant 0 : index
    %c0_10 = arith.constant 0 : index
    %9 = vector.load %arg8[%c0_9, %c0_10] : memref<1x128xf32, #tpu.memory_space<vmem>>, vector<1x128xf32>
    %10 = vector.broadcast %9 : vector<1x128xf32> to vector<64x128xf32>
    %11 = arith.addf %8, %10 : vector<64x128xf32>
    %12 = vector.shape_cast %6 : vector<64x128xf32> to vector<8x8x128xf32>
    %13 = arith.truncf %12 : vector<8x8x128xf32> to vector<8x8x128xbf16>
    %c0_11 = arith.constant 0 : index
    %c0_12 = arith.constant 0 : index
    %c0_13 = arith.constant 0 : index
    %14 = vector.load %arg12[%c0_11, %c0_12, %c0_13] : memref<8x8x128xbf16, #tpu.memory_space<vmem>>, vector<8x8x128xbf16>
    tpu.vector_store %arg12[%c0_11, %c0_12, %c0_13], %13 {strides = array<i32>} : memref<8x8x128xbf16, #tpu.memory_space<vmem>>, vector<8x8x128xbf16>,
    %15 = vector.shape_cast %11 : vector<64x128xf32> to vector<8x8x128xf32>
    %16 = arith.truncf %15 : vector<8x8x128xf32> to vector<8x8x128xbf16>
    %c0_14 = arith.constant 0 : index
    %c0_15 = arith.constant 0 : index
    %c0_16 = arith.constant 0 : index
    %17 = vector.load %arg13[%c0_14, %c0_15, %c0_16] : memref<8x8x128xbf16, #tpu.memory_space<vmem>>, vector<8x8x128xbf16>
    tpu.vector_store %arg13[%c0_14, %c0_15, %c0_16], %16 {strides = array<i32>} : memref<8x8x128xbf16, #tpu.memory_space<vmem>>, vector<8x8x128xbf16>,
    %c0_17 = arith.constant 0 : index
    %c0_18 = arith.constant 0 : index
    %18 = vector.load %arg4[%c0_17, %c0_18] : memref<32x128xbf16, #tpu.memory_space<vmem>>, vector<32x128xbf16>
    %c0_19 = arith.constant 0 : index
    %c0_20 = arith.constant 0 : index
    %19 = vector.load %arg7[%c0_19, %c0_20] : memref<32x128xbf16, #tpu.memory_space<vmem>>, vector<32x128xbf16>
    %c0_21 = arith.constant 0 : index
    %c0_22 = arith.constant 0 : index
    %c0_23 = arith.constant 0 : index
    %20 = vector.load %arg2[%c0_21, %c0_22, %c0_23] : memref<1x8x1xi32, #tpu.memory_space<vmem>>, vector<1x8x1xi32>
    %21 = vector.shape_cast %20 : vector<1x8x1xi32> to vector<8x1xi32>
    %22 = vector.shape_cast %21 : vector<8x1xi32> to vector<8x1xi32>
    %23 = vector.broadcast %22 : vector<8x1xi32> to vector<8x32xi32>
    %cst_24 = arith.constant 0.000000e+00 : f32
    %24 = vector.broadcast %cst_24 : f32 to vector<8x32xf32>
    %c0_i32 = arith.constant 0 : i32
    %25 = arith.index_cast %c0_i32 : i32 to index
    %c0_25 = arith.constant 0 : index
    %c0_26 = arith.constant 0 : index
    %26 = vector.load %arg12[%25, %c0_25, %c0_26] : memref<8x8x128xbf16, #tpu.memory_space<vmem>>, vector<1x8x128xbf16>
    %27 = vector.shape_cast %26 : vector<1x8x128xbf16> to vector<8x128xbf16>
    %28 = arith.extf %27 : vector<8x128xbf16> to vector<8x128xf32>
    %29 = arith.truncf %24 : vector<8x32xf32> to vector<8x32xbf16>
    %cst_27 = arith.constant dense<0.000000e+00> : vector<8x128xf32>
    %30 = tpu.matmul %29, %18, %cst_27 {dimension_numbers = #tpu.dot_dimension_numbers<[1], [0], [0], [1], [0, 0, 1, 1], [], []>} : vector<8x32xbf16>, vector<32x128xbf16>, vector<8x128xf32> -> vector<8x128xf32>
    %31 = arith.addf %28, %30 : vector<8x128xf32>
    %32 = vector.extract_strided_slice %31 {offsets = [0, 0], sizes = [8, 96], strides = [1, 1]} : vector<8x128xf32> to vector<8x96xf32>
    %33 = arith.negf %32 : vector<8x96xf32>
    %34 = math.exp %33 : vector<8x96xf32>
    %cst_28 = arith.constant 1.000000e+00 : f32
    %35 = vector.broadcast %cst_28 : f32 to vector<8x96xf32>
    %36 = arith.addf %35, %34 : vector<8x96xf32>
    %37 = arith.divf %35, %36 : vector<8x96xf32>
    %38 = vector.extract_strided_slice %31 {offsets = [0, 96], sizes = [8, 32], strides = [1, 1]} : vector<8x128xf32> to vector<8x32xf32>
    %39 = math.tanh %38 : vector<8x32xf32>
    %40 = vector.extract_strided_slice %37 {offsets = [0, 0], sizes = [8, 32], strides = [1, 1]} : vector<8x96xf32> to vector<8x32xf32>
    %41 = vector.extract_strided_slice %37 {offsets = [0, 32], sizes = [8, 32], strides = [1, 1]} : vector<8x96xf32> to vector<8x32xf32>
    %42 = vector.extract_strided_slice %37 {offsets = [0, 64], sizes = [8, 32], strides = [1, 1]} : vector<8x96xf32> to vector<8x32xf32>
    %43 = arith.mulf %41, %24 : vector<8x32xf32>
    %44 = arith.mulf %40, %39 : vector<8x32xf32>
    %45 = arith.addf %43, %44 : vector<8x32xf32>
    %46 = math.tanh %45 : vector<8x32xf32>
    %47 = arith.mulf %42, %46 : vector<8x32xf32>
    %48 = vector.broadcast %c0_i32 : i32 to vector<8x32xi32>
    %49 = arith.cmpi slt, %48, %23 : vector<8x32xi32>
    %50 = arith.select %49, %47, %24 : vector<8x32xi1>, vector<8x32xf32>
    %51 = arith.select %49, %45, %24 : vector<8x32xi1>, vector<8x32xf32>
    %c7_i32 = arith.constant 7 : i32
    %52 = arith.subi %c7_i32, %c0_i32 : i32
    %53 = arith.index_cast %52 : i32 to index
    %c0_29 = arith.constant 0 : index
    %c0_30 = arith.constant 0 : index
    %54 = vector.load %arg13[%53, %c0_29, %c0_30] : memref<8x8x128xbf16, #tpu.memory_space<vmem>>, vector<1x8x128xbf16>
    %55 = vector.shape_cast %54 : vector<1x8x128xbf16> to vector<8x128xbf16>
    %56 = arith.extf %55 : vector<8x128xbf16> to vector<8x128xf32>
    %57 = arith.truncf %24 : vector<8x32xf32> to vector<8x32xbf16>
    %cst_31 = arith.constant dense<0.000000e+00> : vector<8x128xf32>
    %58 = tpu.matmul %57, %19, %cst_31 {dimension_numbers = #tpu.dot_dimension_numbers<[1], [0], [0], [1], [0, 0, 1, 1], [], []>} : vector<8x32xbf16>, vector<32x128xbf16>, vector<8x128xf32> -> vector<8x128xf32>
    %59 = arith.addf %56, %58 : vector<8x128xf32>
    %60 = vector.extract_strided_slice %59 {offsets = [0, 0], sizes = [8, 96], strides = [1, 1]} : vector<8x128xf32> to vector<8x96xf32>
    %61 = arith.negf %60 : vector<8x96xf32>
    %62 = math.exp %61 : vector<8x96xf32>
    %cst_32 = arith.constant 1.000000e+00 : f32
    %63 = vector.broadcast %cst_32 : f32 to vector<8x96xf32>
    %64 = arith.addf %63, %62 : vector<8x96xf32>
    %65 = arith.divf %63, %64 : vector<8x96xf32>
    %66 = vector.extract_strided_slice %59 {offsets = [0, 96], sizes = [8, 32], strides = [1, 1]} : vector<8x128xf32> to vector<8x32xf32>
    %67 = math.tanh %66 : vector<8x32xf32>
    %68 = vector.extract_strided_slice %65 {offsets = [0, 0], sizes = [8, 32], strides = [1, 1]} : vector<8x96xf32> to vector<8x32xf32>
    %69 = vector.extract_strided_slice %65 {offsets = [0, 32], sizes = [8, 32], strides = [1, 1]} : vector<8x96xf32> to vector<8x32xf32>
    %70 = vector.extract_strided_slice %65 {offsets = [0, 64], sizes = [8, 32], strides = [1, 1]} : vector<8x96xf32> to vector<8x32xf32>
    %71 = arith.mulf %69, %24 : vector<8x32xf32>
    %72 = arith.mulf %68, %67 : vector<8x32xf32>
    %73 = arith.addf %71, %72 : vector<8x32xf32>
    %74 = math.tanh %73 : vector<8x32xf32>
    %75 = arith.mulf %70, %74 : vector<8x32xf32>
    %76 = vector.broadcast %52 : i32 to vector<8x32xi32>
    %77 = arith.cmpi slt, %76, %23 : vector<8x32xi32>
    %78 = arith.select %77, %75, %24 : vector<8x32xi1>, vector<8x32xf32>
    %79 = arith.select %77, %73, %24 : vector<8x32xi1>, vector<8x32xf32>
    %c1_i32 = arith.constant 1 : i32
    %80 = arith.index_cast %c1_i32 : i32 to index
    %c0_33 = arith.constant 0 : index
    %c0_34 = arith.constant 0 : index
    %81 = vector.load %arg12[%80, %c0_33, %c0_34] : memref<8x8x128xbf16, #tpu.memory_space<vmem>>, vector<1x8x128xbf16>
    %82 = vector.shape_cast %81 : vector<1x8x128xbf16> to vector<8x128xbf16>
    %83 = arith.extf %82 : vector<8x128xbf16> to vector<8x128xf32>
    %84 = arith.truncf %50 : vector<8x32xf32> to vector<8x32xbf16>
    %cst_35 = arith.constant dense<0.000000e+00> : vector<8x128xf32>
    %85 = tpu.matmul %84, %18, %cst_35 {dimension_numbers = #tpu.dot_dimension_numbers<[1], [0], [0], [1], [0, 0, 1, 1], [], []>} : vector<8x32xbf16>, vector<32x128xbf16>, vector<8x128xf32> -> vector<8x128xf32>
    %86 = arith.addf %83, %85 : vector<8x128xf32>
    %87 = vector.extract_strided_slice %86 {offsets = [0, 0], sizes = [8, 96], strides = [1, 1]} : vector<8x128xf32> to vector<8x96xf32>
    %88 = arith.negf %87 : vector<8x96xf32>
    %89 = math.exp %88 : vector<8x96xf32>
    %cst_36 = arith.constant 1.000000e+00 : f32
    %90 = vector.broadcast %cst_36 : f32 to vector<8x96xf32>
    %91 = arith.addf %90, %89 : vector<8x96xf32>
    %92 = arith.divf %90, %91 : vector<8x96xf32>
    %93 = vector.extract_strided_slice %86 {offsets = [0, 96], sizes = [8, 32], strides = [1, 1]} : vector<8x128xf32> to vector<8x32xf32>
    %94 = math.tanh %93 : vector<8x32xf32>
    %95 = vector.extract_strided_slice %92 {offsets = [0, 0], sizes = [8, 32], strides = [1, 1]} : vector<8x96xf32> to vector<8x32xf32>
    %96 = vector.extract_strided_slice %92 {offsets = [0, 32], sizes = [8, 32], strides = [1, 1]} : vector<8x96xf32> to vector<8x32xf32>
    %97 = vector.extract_strided_slice %92 {offsets = [0, 64], sizes = [8, 32], strides = [1, 1]} : vector<8x96xf32> to vector<8x32xf32>
    %98 = arith.mulf %96, %51 : vector<8x32xf32>
    %99 = arith.mulf %95, %94 : vector<8x32xf32>
    %100 = arith.addf %98, %99 : vector<8x32xf32>
    %101 = math.tanh %100 : vector<8x32xf32>
    %102 = arith.mulf %97, %101 : vector<8x32xf32>
    %103 = vector.broadcast %c1_i32 : i32 to vector<8x32xi32>
    %104 = arith.cmpi slt, %103, %23 : vector<8x32xi32>
    %105 = arith.select %104, %102, %50 : vector<8x32xi1>, vector<8x32xf32>
    %106 = arith.select %104, %100, %51 : vector<8x32xi1>, vector<8x32xf32>
    %c7_i32_37 = arith.constant 7 : i32
    %107 = arith.subi %c7_i32_37, %c1_i32 : i32
    %108 = arith.index_cast %107 : i32 to index
    %c0_38 = arith.constant 0 : index
    %c0_39 = arith.constant 0 : index
    %109 = vector.load %arg13[%108, %c0_38, %c0_39] : memref<8x8x128xbf16, #tpu.memory_space<vmem>>, vector<1x8x128xbf16>
    %110 = vector.shape_cast %109 : vector<1x8x128xbf16> to vector<8x128xbf16>
    %111 = arith.extf %110 : vector<8x128xbf16> to vector<8x128xf32>
    %112 = arith.truncf %78 : vector<8x32xf32> to vector<8x32xbf16>
    %cst_40 = arith.constant dense<0.000000e+00> : vector<8x128xf32>
    %113 = tpu.matmul %112, %19, %cst_40 {dimension_numbers = #tpu.dot_dimension_numbers<[1], [0], [0], [1], [0, 0, 1, 1], [], []>} : vector<8x32xbf16>, vector<32x128xbf16>, vector<8x128xf32> -> vector<8x128xf32>
    %114 = arith.addf %111, %113 : vector<8x128xf32>
    %115 = vector.extract_strided_slice %114 {offsets = [0, 0], sizes = [8, 96], strides = [1, 1]} : vector<8x128xf32> to vector<8x96xf32>
    %116 = arith.negf %115 : vector<8x96xf32>
    %117 = math.exp %116 : vector<8x96xf32>
    %cst_41 = arith.constant 1.000000e+00 : f32
    %118 = vector.broadcast %cst_41 : f32 to vector<8x96xf32>
    %119 = arith.addf %118, %117 : vector<8x96xf32>
    %120 = arith.divf %118, %119 : vector<8x96xf32>
    %121 = vector.extract_strided_slice %114 {offsets = [0, 96], sizes = [8, 32], strides = [1, 1]} : vector<8x128xf32> to vector<8x32xf32>
    %122 = math.tanh %121 : vector<8x32xf32>
    %123 = vector.extract_strided_slice %120 {offsets = [0, 0], sizes = [8, 32], strides = [1, 1]} : vector<8x96xf32> to vector<8x32xf32>
    %124 = vector.extract_strided_slice %120 {offsets = [0, 32], sizes = [8, 32], strides = [1, 1]} : vector<8x96xf32> to vector<8x32xf32>
    %125 = vector.extract_strided_slice %120 {offsets = [0, 64], sizes = [8, 32], strides = [1, 1]} : vector<8x96xf32> to vector<8x32xf32>
    %126 = arith.mulf %124, %79 : vector<8x32xf32>
    %127 = arith.mulf %123, %122 : vector<8x32xf32>
    %128 = arith.addf %126, %127 : vector<8x32xf32>
    %129 = math.tanh %128 : vector<8x32xf32>
    %130 = arith.mulf %125, %129 : vector<8x32xf32>
    %131 = vector.broadcast %107 : i32 to vector<8x32xi32>
    %132 = arith.cmpi slt, %131, %23 : vector<8x32xi32>
    %133 = arith.select %132, %130, %78 : vector<8x32xi1>, vector<8x32xf32>
    %134 = arith.select %132, %128, %79 : vector<8x32xi1>, vector<8x32xf32>
    %c2_i32 = arith.constant 2 : i32
    %135 = arith.index_cast %c2_i32 : i32 to index
    %c0_42 = arith.constant 0 : index
    %c0_43 = arith.constant 0 : index
    %136 = vector.load %arg12[%135, %c0_42, %c0_43] : memref<8x8x128xbf16, #tpu.memory_space<vmem>>, vector<1x8x128xbf16>
    %137 = vector.shape_cast %136 : vector<1x8x128xbf16> to vector<8x128xbf16>
    %138 = arith.extf %137 : vector<8x128xbf16> to vector<8x128xf32>
    %139 = arith.truncf %105 : vector<8x32xf32> to vector<8x32xbf16>
    %cst_44 = arith.constant dense<0.000000e+00> : vector<8x128xf32>
    %140 = tpu.matmul %139, %18, %cst_44 {dimension_numbers = #tpu.dot_dimension_numbers<[1], [0], [0], [1], [0, 0, 1, 1], [], []>} : vector<8x32xbf16>, vector<32x128xbf16>, vector<8x128xf32> -> vector<8x128xf32>
    %141 = arith.addf %138, %140 : vector<8x128xf32>
    %142 = vector.extract_strided_slice %141 {offsets = [0, 0], sizes = [8, 96], strides = [1, 1]} : vector<8x128xf32> to vector<8x96xf32>
    %143 = arith.negf %142 : vector<8x96xf32>
    %144 = math.exp %143 : vector<8x96xf32>
    %cst_45 = arith.constant 1.000000e+00 : f32
    %145 = vector.broadcast %cst_45 : f32 to vector<8x96xf32>
    %146 = arith.addf %145, %144 : vector<8x96xf32>
    %147 = arith.divf %145, %146 : vector<8x96xf32>
    %148 = vector.extract_strided_slice %141 {offsets = [0, 96], sizes = [8, 32], strides = [1, 1]} : vector<8x128xf32> to vector<8x32xf32>
    %149 = math.tanh %148 : vector<8x32xf32>
    %150 = vector.extract_strided_slice %147 {offsets = [0, 0], sizes = [8, 32], strides = [1, 1]} : vector<8x96xf32> to vector<8x32xf32>
    %151 = vector.extract_strided_slice %147 {offsets = [0, 32], sizes = [8, 32], strides = [1, 1]} : vector<8x96xf32> to vector<8x32xf32>
    %152 = vector.extract_strided_slice %147 {offsets = [0, 64], sizes = [8, 32], strides = [1, 1]} : vector<8x96xf32> to vector<8x32xf32>
    %153 = arith.mulf %151, %106 : vector<8x32xf32>
    %154 = arith.mulf %150, %149 : vector<8x32xf32>
    %155 = arith.addf %153, %154 : vector<8x32xf32>
    %156 = math.tanh %155 : vector<8x32xf32>
    %157 = arith.mulf %152, %156 : vector<8x32xf32>
    %158 = vector.broadcast %c2_i32 : i32 to vector<8x32xi32>
    %159 = arith.cmpi slt, %158, %23 : vector<8x32xi32>
    %160 = arith.select %159, %157, %105 : vector<8x32xi1>, vector<8x32xf32>
    %161 = arith.select %159, %155, %106 : vector<8x32xi1>, vector<8x32xf32>
    %c7_i32_46 = arith.constant 7 : i32
    %162 = arith.subi %c7_i32_46, %c2_i32 : i32
    %163 = arith.index_cast %162 : i32 to index
    %c0_47 = arith.constant 0 : index
    %c0_48 = arith.constant 0 : index
    %164 = vector.load %arg13[%163, %c0_47, %c0_48] : memref<8x8x128xbf16, #tpu.memory_space<vmem>>, vector<1x8x128xbf16>
    %165 = vector.shape_cast %164 : vector<1x8x128xbf16> to vector<8x128xbf16>
    %166 = arith.extf %165 : vector<8x128xbf16> to vector<8x128xf32>
    %167 = arith.truncf %133 : vector<8x32xf32> to vector<8x32xbf16>
    %cst_49 = arith.constant dense<0.000000e+00> : vector<8x128xf32>
    %168 = tpu.matmul %167, %19, %cst_49 {dimension_numbers = #tpu.dot_dimension_numbers<[1], [0], [0], [1], [0, 0, 1, 1], [], []>} : vector<8x32xbf16>, vector<32x128xbf16>, vector<8x128xf32> -> vector<8x128xf32>
    %169 = arith.addf %166, %168 : vector<8x128xf32>
    %170 = vector.extract_strided_slice %169 {offsets = [0, 0], sizes = [8, 96], strides = [1, 1]} : vector<8x128xf32> to vector<8x96xf32>
    %171 = arith.negf %170 : vector<8x96xf32>
    %172 = math.exp %171 : vector<8x96xf32>
    %cst_50 = arith.constant 1.000000e+00 : f32
    %173 = vector.broadcast %cst_50 : f32 to vector<8x96xf32>
    %174 = arith.addf %173, %172 : vector<8x96xf32>
    %175 = arith.divf %173, %174 : vector<8x96xf32>
    %176 = vector.extract_strided_slice %169 {offsets = [0, 96], sizes = [8, 32], strides = [1, 1]} : vector<8x128xf32> to vector<8x32xf32>
    %177 = math.tanh %176 : vector<8x32xf32>
    %178 = vector.extract_strided_slice %175 {offsets = [0, 0], sizes = [8, 32], strides = [1, 1]} : vector<8x96xf32> to vector<8x32xf32>
    %179 = vector.extract_strided_slice %175 {offsets = [0, 32], sizes = [8, 32], strides = [1, 1]} : vector<8x96xf32> to vector<8x32xf32>
    %180 = vector.extract_strided_slice %175 {offsets = [0, 64], sizes = [8, 32], strides = [1, 1]} : vector<8x96xf32> to vector<8x32xf32>
    %181 = arith.mulf %179, %134 : vector<8x32xf32>
    %182 = arith.mulf %178, %177 : vector<8x32xf32>
    %183 = arith.addf %181, %182 : vector<8x32xf32>
    %184 = math.tanh %183 : vector<8x32xf32>
    %185 = arith.mulf %180, %184 : vector<8x32xf32>
    %186 = vector.broadcast %162 : i32 to vector<8x32xi32>
    %187 = arith.cmpi slt, %186, %23 : vector<8x32xi32>
    %188 = arith.select %187, %185, %133 : vector<8x32xi1>, vector<8x32xf32>
    %189 = arith.select %187, %183, %134 : vector<8x32xi1>, vector<8x32xf32>
    %c3_i32 = arith.constant 3 : i32
    %190 = arith.index_cast %c3_i32 : i32 to index
    %c0_51 = arith.constant 0 : index
    %c0_52 = arith.constant 0 : index
    %191 = vector.load %arg12[%190, %c0_51, %c0_52] : memref<8x8x128xbf16, #tpu.memory_space<vmem>>, vector<1x8x128xbf16>
    %192 = vector.shape_cast %191 : vector<1x8x128xbf16> to vector<8x128xbf16>
    %193 = arith.extf %192 : vector<8x128xbf16> to vector<8x128xf32>
    %194 = arith.truncf %160 : vector<8x32xf32> to vector<8x32xbf16>
    %cst_53 = arith.constant dense<0.000000e+00> : vector<8x128xf32>
    %195 = tpu.matmul %194, %18, %cst_53 {dimension_numbers = #tpu.dot_dimension_numbers<[1], [0], [0], [1], [0, 0, 1, 1], [], []>} : vector<8x32xbf16>, vector<32x128xbf16>, vector<8x128xf32> -> vector<8x128xf32>
    %196 = arith.addf %193, %195 : vector<8x128xf32>
    %197 = vector.extract_strided_slice %196 {offsets = [0, 0], sizes = [8, 96], strides = [1, 1]} : vector<8x128xf32> to vector<8x96xf32>
    %198 = arith.negf %197 : vector<8x96xf32>
    %199 = math.exp %198 : vector<8x96xf32>
    %cst_54 = arith.constant 1.000000e+00 : f32
    %200 = vector.broadcast %cst_54 : f32 to vector<8x96xf32>
    %201 = arith.addf %200, %199 : vector<8x96xf32>
    %202 = arith.divf %200, %201 : vector<8x96xf32>
    %203 = vector.extract_strided_slice %196 {offsets = [0, 96], sizes = [8, 32], strides = [1, 1]} : vector<8x128xf32> to vector<8x32xf32>
    %204 = math.tanh %203 : vector<8x32xf32>
    %205 = vector.extract_strided_slice %202 {offsets = [0, 0], sizes = [8, 32], strides = [1, 1]} : vector<8x96xf32> to vector<8x32xf32>
    %206 = vector.extract_strided_slice %202 {offsets = [0, 32], sizes = [8, 32], strides = [1, 1]} : vector<8x96xf32> to vector<8x32xf32>
    %207 = vector.extract_strided_slice %202 {offsets = [0, 64], sizes = [8, 32], strides = [1, 1]} : vector<8x96xf32> to vector<8x32xf32>
    %208 = arith.mulf %206, %161 : vector<8x32xf32>
    %209 = arith.mulf %205, %204 : vector<8x32xf32>
    %210 = arith.addf %208, %209 : vector<8x32xf32>
    %211 = math.tanh %210 : vector<8x32xf32>
    %212 = arith.mulf %207, %211 : vector<8x32xf32>
    %213 = vector.broadcast %c3_i32 : i32 to vector<8x32xi32>
    %214 = arith.cmpi slt, %213, %23 : vector<8x32xi32>
    %215 = arith.select %214, %212, %160 : vector<8x32xi1>, vector<8x32xf32>
    %216 = arith.select %214, %210, %161 : vector<8x32xi1>, vector<8x32xf32>
    %c7_i32_55 = arith.constant 7 : i32
    %217 = arith.subi %c7_i32_55, %c3_i32 : i32
    %218 = arith.index_cast %217 : i32 to index
    %c0_56 = arith.constant 0 : index
    %c0_57 = arith.constant 0 : index
    %219 = vector.load %arg13[%218, %c0_56, %c0_57] : memref<8x8x128xbf16, #tpu.memory_space<vmem>>, vector<1x8x128xbf16>
    %220 = vector.shape_cast %219 : vector<1x8x128xbf16> to vector<8x128xbf16>
    %221 = arith.extf %220 : vector<8x128xbf16> to vector<8x128xf32>
    %222 = arith.truncf %188 : vector<8x32xf32> to vector<8x32xbf16>
    %cst_58 = arith.constant dense<0.000000e+00> : vector<8x128xf32>
    %223 = tpu.matmul %222, %19, %cst_58 {dimension_numbers = #tpu.dot_dimension_numbers<[1], [0], [0], [1], [0, 0, 1, 1], [], []>} : vector<8x32xbf16>, vector<32x128xbf16>, vector<8x128xf32> -> vector<8x128xf32>
    %224 = arith.addf %221, %223 : vector<8x128xf32>
    %225 = vector.extract_strided_slice %224 {offsets = [0, 0], sizes = [8, 96], strides = [1, 1]} : vector<8x128xf32> to vector<8x96xf32>
    %226 = arith.negf %225 : vector<8x96xf32>
    %227 = math.exp %226 : vector<8x96xf32>
    %cst_59 = arith.constant 1.000000e+00 : f32
    %228 = vector.broadcast %cst_59 : f32 to vector<8x96xf32>
    %229 = arith.addf %228, %227 : vector<8x96xf32>
    %230 = arith.divf %228, %229 : vector<8x96xf32>
    %231 = vector.extract_strided_slice %224 {offsets = [0, 96], sizes = [8, 32], strides = [1, 1]} : vector<8x128xf32> to vector<8x32xf32>
    %232 = math.tanh %231 : vector<8x32xf32>
    %233 = vector.extract_strided_slice %230 {offsets = [0, 0], sizes = [8, 32], strides = [1, 1]} : vector<8x96xf32> to vector<8x32xf32>
    %234 = vector.extract_strided_slice %230 {offsets = [0, 32], sizes = [8, 32], strides = [1, 1]} : vector<8x96xf32> to vector<8x32xf32>
    %235 = vector.extract_strided_slice %230 {offsets = [0, 64], sizes = [8, 32], strides = [1, 1]} : vector<8x96xf32> to vector<8x32xf32>
    %236 = arith.mulf %234, %189 : vector<8x32xf32>
    %237 = arith.mulf %233, %232 : vector<8x32xf32>
    %238 = arith.addf %236, %237 : vector<8x32xf32>
    %239 = math.tanh %238 : vector<8x32xf32>
    %240 = arith.mulf %235, %239 : vector<8x32xf32>
    %241 = vector.broadcast %217 : i32 to vector<8x32xi32>
    %242 = arith.cmpi slt, %241, %23 : vector<8x32xi32>
    %243 = arith.select %242, %240, %188 : vector<8x32xi1>, vector<8x32xf32>
    %244 = arith.select %242, %238, %189 : vector<8x32xi1>, vector<8x32xf32>
    %c4_i32 = arith.constant 4 : i32
    %245 = arith.index_cast %c4_i32 : i32 to index
    %c0_60 = arith.constant 0 : index
    %c0_61 = arith.constant 0 : index
    %246 = vector.load %arg12[%245, %c0_60, %c0_61] : memref<8x8x128xbf16, #tpu.memory_space<vmem>>, vector<1x8x128xbf16>
    %247 = vector.shape_cast %246 : vector<1x8x128xbf16> to vector<8x128xbf16>
    %248 = arith.extf %247 : vector<8x128xbf16> to vector<8x128xf32>
    %249 = arith.truncf %215 : vector<8x32xf32> to vector<8x32xbf16>
    %cst_62 = arith.constant dense<0.000000e+00> : vector<8x128xf32>
    %250 = tpu.matmul %249, %18, %cst_62 {dimension_numbers = #tpu.dot_dimension_numbers<[1], [0], [0], [1], [0, 0, 1, 1], [], []>} : vector<8x32xbf16>, vector<32x128xbf16>, vector<8x128xf32> -> vector<8x128xf32>
    %251 = arith.addf %248, %250 : vector<8x128xf32>
    %252 = vector.extract_strided_slice %251 {offsets = [0, 0], sizes = [8, 96], strides = [1, 1]} : vector<8x128xf32> to vector<8x96xf32>
    %253 = arith.negf %252 : vector<8x96xf32>
    %254 = math.exp %253 : vector<8x96xf32>
    %cst_63 = arith.constant 1.000000e+00 : f32
    %255 = vector.broadcast %cst_63 : f32 to vector<8x96xf32>
    %256 = arith.addf %255, %254 : vector<8x96xf32>
    %257 = arith.divf %255, %256 : vector<8x96xf32>
    %258 = vector.extract_strided_slice %251 {offsets = [0, 96], sizes = [8, 32], strides = [1, 1]} : vector<8x128xf32> to vector<8x32xf32>
    %259 = math.tanh %258 : vector<8x32xf32>
    %260 = vector.extract_strided_slice %257 {offsets = [0, 0], sizes = [8, 32], strides = [1, 1]} : vector<8x96xf32> to vector<8x32xf32>
    %261 = vector.extract_strided_slice %257 {offsets = [0, 32], sizes = [8, 32], strides = [1, 1]} : vector<8x96xf32> to vector<8x32xf32>
    %262 = vector.extract_strided_slice %257 {offsets = [0, 64], sizes = [8, 32], strides = [1, 1]} : vector<8x96xf32> to vector<8x32xf32>
    %263 = arith.mulf %261, %216 : vector<8x32xf32>
    %264 = arith.mulf %260, %259 : vector<8x32xf32>
    %265 = arith.addf %263, %264 : vector<8x32xf32>
    %266 = math.tanh %265 : vector<8x32xf32>
    %267 = arith.mulf %262, %266 : vector<8x32xf32>
    %268 = vector.broadcast %c4_i32 : i32 to vector<8x32xi32>
    %269 = arith.cmpi slt, %268, %23 : vector<8x32xi32>
    %270 = arith.select %269, %267, %215 : vector<8x32xi1>, vector<8x32xf32>
    %271 = arith.select %269, %265, %216 : vector<8x32xi1>, vector<8x32xf32>
    %c7_i32_64 = arith.constant 7 : i32
    %272 = arith.subi %c7_i32_64, %c4_i32 : i32
    %273 = arith.index_cast %272 : i32 to index
    %c0_65 = arith.constant 0 : index
    %c0_66 = arith.constant 0 : index
    %274 = vector.load %arg13[%273, %c0_65, %c0_66] : memref<8x8x128xbf16, #tpu.memory_space<vmem>>, vector<1x8x128xbf16>
    %275 = vector.shape_cast %274 : vector<1x8x128xbf16> to vector<8x128xbf16>
    %276 = arith.extf %275 : vector<8x128xbf16> to vector<8x128xf32>
    %277 = arith.truncf %243 : vector<8x32xf32> to vector<8x32xbf16>
    %cst_67 = arith.constant dense<0.000000e+00> : vector<8x128xf32>
    %278 = tpu.matmul %277, %19, %cst_67 {dimension_numbers = #tpu.dot_dimension_numbers<[1], [0], [0], [1], [0, 0, 1, 1], [], []>} : vector<8x32xbf16>, vector<32x128xbf16>, vector<8x128xf32> -> vector<8x128xf32>
    %279 = arith.addf %276, %278 : vector<8x128xf32>
    %280 = vector.extract_strided_slice %279 {offsets = [0, 0], sizes = [8, 96], strides = [1, 1]} : vector<8x128xf32> to vector<8x96xf32>
    %281 = arith.negf %280 : vector<8x96xf32>
    %282 = math.exp %281 : vector<8x96xf32>
    %cst_68 = arith.constant 1.000000e+00 : f32
    %283 = vector.broadcast %cst_68 : f32 to vector<8x96xf32>
    %284 = arith.addf %283, %282 : vector<8x96xf32>
    %285 = arith.divf %283, %284 : vector<8x96xf32>
    %286 = vector.extract_strided_slice %279 {offsets = [0, 96], sizes = [8, 32], strides = [1, 1]} : vector<8x128xf32> to vector<8x32xf32>
    %287 = math.tanh %286 : vector<8x32xf32>
    %288 = vector.extract_strided_slice %285 {offsets = [0, 0], sizes = [8, 32], strides = [1, 1]} : vector<8x96xf32> to vector<8x32xf32>
    %289 = vector.extract_strided_slice %285 {offsets = [0, 32], sizes = [8, 32], strides = [1, 1]} : vector<8x96xf32> to vector<8x32xf32>
    %290 = vector.extract_strided_slice %285 {offsets = [0, 64], sizes = [8, 32], strides = [1, 1]} : vector<8x96xf32> to vector<8x32xf32>
    %291 = arith.mulf %289, %244 : vector<8x32xf32>
    %292 = arith.mulf %288, %287 : vector<8x32xf32>
    %293 = arith.addf %291, %292 : vector<8x32xf32>
    %294 = math.tanh %293 : vector<8x32xf32>
    %295 = arith.mulf %290, %294 : vector<8x32xf32>
    %296 = vector.broadcast %272 : i32 to vector<8x32xi32>
    %297 = arith.cmpi slt, %296, %23 : vector<8x32xi32>
    %298 = arith.select %297, %295, %243 : vector<8x32xi1>, vector<8x32xf32>
    %299 = arith.select %297, %293, %244 : vector<8x32xi1>, vector<8x32xf32>
    %c5_i32 = arith.constant 5 : i32
    %300 = arith.index_cast %c5_i32 : i32 to index
    %c0_69 = arith.constant 0 : index
    %c0_70 = arith.constant 0 : index
    %301 = vector.load %arg12[%300, %c0_69, %c0_70] : memref<8x8x128xbf16, #tpu.memory_space<vmem>>, vector<1x8x128xbf16>
    %302 = vector.shape_cast %301 : vector<1x8x128xbf16> to vector<8x128xbf16>
    %303 = arith.extf %302 : vector<8x128xbf16> to vector<8x128xf32>
    %304 = arith.truncf %270 : vector<8x32xf32> to vector<8x32xbf16>
    %cst_71 = arith.constant dense<0.000000e+00> : vector<8x128xf32>
    %305 = tpu.matmul %304, %18, %cst_71 {dimension_numbers = #tpu.dot_dimension_numbers<[1], [0], [0], [1], [0, 0, 1, 1], [], []>} : vector<8x32xbf16>, vector<32x128xbf16>, vector<8x128xf32> -> vector<8x128xf32>
    %306 = arith.addf %303, %305 : vector<8x128xf32>
    %307 = vector.extract_strided_slice %306 {offsets = [0, 0], sizes = [8, 96], strides = [1, 1]} : vector<8x128xf32> to vector<8x96xf32>
    %308 = arith.negf %307 : vector<8x96xf32>
    %309 = math.exp %308 : vector<8x96xf32>
    %cst_72 = arith.constant 1.000000e+00 : f32
    %310 = vector.broadcast %cst_72 : f32 to vector<8x96xf32>
    %311 = arith.addf %310, %309 : vector<8x96xf32>
    %312 = arith.divf %310, %311 : vector<8x96xf32>
    %313 = vector.extract_strided_slice %306 {offsets = [0, 96], sizes = [8, 32], strides = [1, 1]} : vector<8x128xf32> to vector<8x32xf32>
    %314 = math.tanh %313 : vector<8x32xf32>
    %315 = vector.extract_strided_slice %312 {offsets = [0, 0], sizes = [8, 32], strides = [1, 1]} : vector<8x96xf32> to vector<8x32xf32>
    %316 = vector.extract_strided_slice %312 {offsets = [0, 32], sizes = [8, 32], strides = [1, 1]} : vector<8x96xf32> to vector<8x32xf32>
    %317 = vector.extract_strided_slice %312 {offsets = [0, 64], sizes = [8, 32], strides = [1, 1]} : vector<8x96xf32> to vector<8x32xf32>
    %318 = arith.mulf %316, %271 : vector<8x32xf32>
    %319 = arith.mulf %315, %314 : vector<8x32xf32>
    %320 = arith.addf %318, %319 : vector<8x32xf32>
    %321 = math.tanh %320 : vector<8x32xf32>
    %322 = arith.mulf %317, %321 : vector<8x32xf32>
    %323 = vector.broadcast %c5_i32 : i32 to vector<8x32xi32>
    %324 = arith.cmpi slt, %323, %23 : vector<8x32xi32>
    %325 = arith.select %324, %322, %270 : vector<8x32xi1>, vector<8x32xf32>
    %326 = arith.select %324, %320, %271 : vector<8x32xi1>, vector<8x32xf32>
    %c7_i32_73 = arith.constant 7 : i32
    %327 = arith.subi %c7_i32_73, %c5_i32 : i32
    %328 = arith.index_cast %327 : i32 to index
    %c0_74 = arith.constant 0 : index
    %c0_75 = arith.constant 0 : index
    %329 = vector.load %arg13[%328, %c0_74, %c0_75] : memref<8x8x128xbf16, #tpu.memory_space<vmem>>, vector<1x8x128xbf16>
    %330 = vector.shape_cast %329 : vector<1x8x128xbf16> to vector<8x128xbf16>
    %331 = arith.extf %330 : vector<8x128xbf16> to vector<8x128xf32>
    %332 = arith.truncf %298 : vector<8x32xf32> to vector<8x32xbf16>
    %cst_76 = arith.constant dense<0.000000e+00> : vector<8x128xf32>
    %333 = tpu.matmul %332, %19, %cst_76 {dimension_numbers = #tpu.dot_dimension_numbers<[1], [0], [0], [1], [0, 0, 1, 1], [], []>} : vector<8x32xbf16>, vector<32x128xbf16>, vector<8x128xf32> -> vector<8x128xf32>
    %334 = arith.addf %331, %333 : vector<8x128xf32>
    %335 = vector.extract_strided_slice %334 {offsets = [0, 0], sizes = [8, 96], strides = [1, 1]} : vector<8x128xf32> to vector<8x96xf32>
    %336 = arith.negf %335 : vector<8x96xf32>
    %337 = math.exp %336 : vector<8x96xf32>
    %cst_77 = arith.constant 1.000000e+00 : f32
    %338 = vector.broadcast %cst_77 : f32 to vector<8x96xf32>
    %339 = arith.addf %338, %337 : vector<8x96xf32>
    %340 = arith.divf %338, %339 : vector<8x96xf32>
    %341 = vector.extract_strided_slice %334 {offsets = [0, 96], sizes = [8, 32], strides = [1, 1]} : vector<8x128xf32> to vector<8x32xf32>
    %342 = math.tanh %341 : vector<8x32xf32>
    %343 = vector.extract_strided_slice %340 {offsets = [0, 0], sizes = [8, 32], strides = [1, 1]} : vector<8x96xf32> to vector<8x32xf32>
    %344 = vector.extract_strided_slice %340 {offsets = [0, 32], sizes = [8, 32], strides = [1, 1]} : vector<8x96xf32> to vector<8x32xf32>
    %345 = vector.extract_strided_slice %340 {offsets = [0, 64], sizes = [8, 32], strides = [1, 1]} : vector<8x96xf32> to vector<8x32xf32>
    %346 = arith.mulf %344, %299 : vector<8x32xf32>
    %347 = arith.mulf %343, %342 : vector<8x32xf32>
    %348 = arith.addf %346, %347 : vector<8x32xf32>
    %349 = math.tanh %348 : vector<8x32xf32>
    %350 = arith.mulf %345, %349 : vector<8x32xf32>
    %351 = vector.broadcast %327 : i32 to vector<8x32xi32>
    %352 = arith.cmpi slt, %351, %23 : vector<8x32xi32>
    %353 = arith.select %352, %350, %298 : vector<8x32xi1>, vector<8x32xf32>
    %354 = arith.select %352, %348, %299 : vector<8x32xi1>, vector<8x32xf32>
    %c6_i32 = arith.constant 6 : i32
    %355 = arith.index_cast %c6_i32 : i32 to index
    %c0_78 = arith.constant 0 : index
    %c0_79 = arith.constant 0 : index
    %356 = vector.load %arg12[%355, %c0_78, %c0_79] : memref<8x8x128xbf16, #tpu.memory_space<vmem>>, vector<1x8x128xbf16>
    %357 = vector.shape_cast %356 : vector<1x8x128xbf16> to vector<8x128xbf16>
    %358 = arith.extf %357 : vector<8x128xbf16> to vector<8x128xf32>
    %359 = arith.truncf %325 : vector<8x32xf32> to vector<8x32xbf16>
    %cst_80 = arith.constant dense<0.000000e+00> : vector<8x128xf32>
    %360 = tpu.matmul %359, %18, %cst_80 {dimension_numbers = #tpu.dot_dimension_numbers<[1], [0], [0], [1], [0, 0, 1, 1], [], []>} : vector<8x32xbf16>, vector<32x128xbf16>, vector<8x128xf32> -> vector<8x128xf32>
    %361 = arith.addf %358, %360 : vector<8x128xf32>
    %362 = vector.extract_strided_slice %361 {offsets = [0, 0], sizes = [8, 96], strides = [1, 1]} : vector<8x128xf32> to vector<8x96xf32>
    %363 = arith.negf %362 : vector<8x96xf32>
    %364 = math.exp %363 : vector<8x96xf32>
    %cst_81 = arith.constant 1.000000e+00 : f32
    %365 = vector.broadcast %cst_81 : f32 to vector<8x96xf32>
    %366 = arith.addf %365, %364 : vector<8x96xf32>
    %367 = arith.divf %365, %366 : vector<8x96xf32>
    %368 = vector.extract_strided_slice %361 {offsets = [0, 96], sizes = [8, 32], strides = [1, 1]} : vector<8x128xf32> to vector<8x32xf32>
    %369 = math.tanh %368 : vector<8x32xf32>
    %370 = vector.extract_strided_slice %367 {offsets = [0, 0], sizes = [8, 32], strides = [1, 1]} : vector<8x96xf32> to vector<8x32xf32>
    %371 = vector.extract_strided_slice %367 {offsets = [0, 32], sizes = [8, 32], strides = [1, 1]} : vector<8x96xf32> to vector<8x32xf32>
    %372 = vector.extract_strided_slice %367 {offsets = [0, 64], sizes = [8, 32], strides = [1, 1]} : vector<8x96xf32> to vector<8x32xf32>
    %373 = arith.mulf %371, %326 : vector<8x32xf32>
    %374 = arith.mulf %370, %369 : vector<8x32xf32>
    %375 = arith.addf %373, %374 : vector<8x32xf32>
    %376 = math.tanh %375 : vector<8x32xf32>
    %377 = arith.mulf %372, %376 : vector<8x32xf32>
    %378 = vector.broadcast %c6_i32 : i32 to vector<8x32xi32>
    %379 = arith.cmpi slt, %378, %23 : vector<8x32xi32>
    %380 = arith.select %379, %377, %325 : vector<8x32xi1>, vector<8x32xf32>
    %381 = arith.select %379, %375, %326 : vector<8x32xi1>, vector<8x32xf32>
    %c7_i32_82 = arith.constant 7 : i32
    %382 = arith.subi %c7_i32_82, %c6_i32 : i32
    %383 = arith.index_cast %382 : i32 to index
    %c0_83 = arith.constant 0 : index
    %c0_84 = arith.constant 0 : index
    %384 = vector.load %arg13[%383, %c0_83, %c0_84] : memref<8x8x128xbf16, #tpu.memory_space<vmem>>, vector<1x8x128xbf16>
    %385 = vector.shape_cast %384 : vector<1x8x128xbf16> to vector<8x128xbf16>
    %386 = arith.extf %385 : vector<8x128xbf16> to vector<8x128xf32>
    %387 = arith.truncf %353 : vector<8x32xf32> to vector<8x32xbf16>
    %cst_85 = arith.constant dense<0.000000e+00> : vector<8x128xf32>
    %388 = tpu.matmul %387, %19, %cst_85 {dimension_numbers = #tpu.dot_dimension_numbers<[1], [0], [0], [1], [0, 0, 1, 1], [], []>} : vector<8x32xbf16>, vector<32x128xbf16>, vector<8x128xf32> -> vector<8x128xf32>
    %389 = arith.addf %386, %388 : vector<8x128xf32>
    %390 = vector.extract_strided_slice %389 {offsets = [0, 0], sizes = [8, 96], strides = [1, 1]} : vector<8x128xf32> to vector<8x96xf32>
    %391 = arith.negf %390 : vector<8x96xf32>
    %392 = math.exp %391 : vector<8x96xf32>
    %cst_86 = arith.constant 1.000000e+00 : f32
    %393 = vector.broadcast %cst_86 : f32 to vector<8x96xf32>
    %394 = arith.addf %393, %392 : vector<8x96xf32>
    %395 = arith.divf %393, %394 : vector<8x96xf32>
    %396 = vector.extract_strided_slice %389 {offsets = [0, 96], sizes = [8, 32], strides = [1, 1]} : vector<8x128xf32> to vector<8x32xf32>
    %397 = math.tanh %396 : vector<8x32xf32>
    %398 = vector.extract_strided_slice %395 {offsets = [0, 0], sizes = [8, 32], strides = [1, 1]} : vector<8x96xf32> to vector<8x32xf32>
    %399 = vector.extract_strided_slice %395 {offsets = [0, 32], sizes = [8, 32], strides = [1, 1]} : vector<8x96xf32> to vector<8x32xf32>
    %400 = vector.extract_strided_slice %395 {offsets = [0, 64], sizes = [8, 32], strides = [1, 1]} : vector<8x96xf32> to vector<8x32xf32>
    %401 = arith.mulf %399, %354 : vector<8x32xf32>
    %402 = arith.mulf %398, %397 : vector<8x32xf32>
    %403 = arith.addf %401, %402 : vector<8x32xf32>
    %404 = math.tanh %403 : vector<8x32xf32>
    %405 = arith.mulf %400, %404 : vector<8x32xf32>
    %406 = vector.broadcast %382 : i32 to vector<8x32xi32>
    %407 = arith.cmpi slt, %406, %23 : vector<8x32xi32>
    %408 = arith.select %407, %405, %353 : vector<8x32xi1>, vector<8x32xf32>
    %409 = arith.select %407, %403, %354 : vector<8x32xi1>, vector<8x32xf32>
    %c7_i32_87 = arith.constant 7 : i32
    %410 = arith.index_cast %c7_i32_87 : i32 to index
    %c0_88 = arith.constant 0 : index
    %c0_89 = arith.constant 0 : index
    %411 = vector.load %arg12[%410, %c0_88, %c0_89] : memref<8x8x128xbf16, #tpu.memory_space<vmem>>, vector<1x8x128xbf16>
    %412 = vector.shape_cast %411 : vector<1x8x128xbf16> to vector<8x128xbf16>
    %413 = arith.extf %412 : vector<8x128xbf16> to vector<8x128xf32>
    %414 = arith.truncf %380 : vector<8x32xf32> to vector<8x32xbf16>
    %cst_90 = arith.constant dense<0.000000e+00> : vector<8x128xf32>
    %415 = tpu.matmul %414, %18, %cst_90 {dimension_numbers = #tpu.dot_dimension_numbers<[1], [0], [0], [1], [0, 0, 1, 1], [], []>} : vector<8x32xbf16>, vector<32x128xbf16>, vector<8x128xf32> -> vector<8x128xf32>
    %416 = arith.addf %413, %415 : vector<8x128xf32>
    %417 = vector.extract_strided_slice %416 {offsets = [0, 0], sizes = [8, 96], strides = [1, 1]} : vector<8x128xf32> to vector<8x96xf32>
    %418 = arith.negf %417 : vector<8x96xf32>
    %419 = math.exp %418 : vector<8x96xf32>
    %cst_91 = arith.constant 1.000000e+00 : f32
    %420 = vector.broadcast %cst_91 : f32 to vector<8x96xf32>
    %421 = arith.addf %420, %419 : vector<8x96xf32>
    %422 = arith.divf %420, %421 : vector<8x96xf32>
    %423 = vector.extract_strided_slice %416 {offsets = [0, 96], sizes = [8, 32], strides = [1, 1]} : vector<8x128xf32> to vector<8x32xf32>
    %424 = math.tanh %423 : vector<8x32xf32>
    %425 = vector.extract_strided_slice %422 {offsets = [0, 0], sizes = [8, 32], strides = [1, 1]} : vector<8x96xf32> to vector<8x32xf32>
    %426 = vector.extract_strided_slice %422 {offsets = [0, 32], sizes = [8, 32], strides = [1, 1]} : vector<8x96xf32> to vector<8x32xf32>
    %427 = vector.extract_strided_slice %422 {offsets = [0, 64], sizes = [8, 32], strides = [1, 1]} : vector<8x96xf32> to vector<8x32xf32>
    %428 = arith.mulf %426, %381 : vector<8x32xf32>
    %429 = arith.mulf %425, %424 : vector<8x32xf32>
    %430 = arith.addf %428, %429 : vector<8x32xf32>
    %431 = math.tanh %430 : vector<8x32xf32>
    %432 = arith.mulf %427, %431 : vector<8x32xf32>
    %433 = vector.broadcast %c7_i32_87 : i32 to vector<8x32xi32>
    %434 = arith.cmpi slt, %433, %23 : vector<8x32xi32>
    %435 = arith.select %434, %432, %380 : vector<8x32xi1>, vector<8x32xf32>
    %436 = arith.select %434, %430, %381 : vector<8x32xi1>, vector<8x32xf32>
    %c7_i32_92 = arith.constant 7 : i32
    %437 = arith.subi %c7_i32_92, %c7_i32_87 : i32
    %438 = arith.index_cast %437 : i32 to index
    %c0_93 = arith.constant 0 : index
    %c0_94 = arith.constant 0 : index
    %439 = vector.load %arg13[%438, %c0_93, %c0_94] : memref<8x8x128xbf16, #tpu.memory_space<vmem>>, vector<1x8x128xbf16>
    %440 = vector.shape_cast %439 : vector<1x8x128xbf16> to vector<8x128xbf16>
    %441 = arith.extf %440 : vector<8x128xbf16> to vector<8x128xf32>
    %442 = arith.truncf %408 : vector<8x32xf32> to vector<8x32xbf16>
    %cst_95 = arith.constant dense<0.000000e+00> : vector<8x128xf32>
    %443 = tpu.matmul %442, %19, %cst_95 {dimension_numbers = #tpu.dot_dimension_numbers<[1], [0], [0], [1], [0, 0, 1, 1], [], []>} : vector<8x32xbf16>, vector<32x128xbf16>, vector<8x128xf32> -> vector<8x128xf32>
    %444 = arith.addf %441, %443 : vector<8x128xf32>
    %445 = vector.extract_strided_slice %444 {offsets = [0, 0], sizes = [8, 96], strides = [1, 1]} : vector<8x128xf32> to vector<8x96xf32>
    %446 = arith.negf %445 : vector<8x96xf32>
    %447 = math.exp %446 : vector<8x96xf32>
    %cst_96 = arith.constant 1.000000e+00 : f32
    %448 = vector.broadcast %cst_96 : f32 to vector<8x96xf32>
    %449 = arith.addf %448, %447 : vector<8x96xf32>
    %450 = arith.divf %448, %449 : vector<8x96xf32>
    %451 = vector.extract_strided_slice %444 {offsets = [0, 96], sizes = [8, 32], strides = [1, 1]} : vector<8x128xf32> to vector<8x32xf32>
    %452 = math.tanh %451 : vector<8x32xf32>
    %453 = vector.extract_strided_slice %450 {offsets = [0, 0], sizes = [8, 32], strides = [1, 1]} : vector<8x96xf32> to vector<8x32xf32>
    %454 = vector.extract_strided_slice %450 {offsets = [0, 32], sizes = [8, 32], strides = [1, 1]} : vector<8x96xf32> to vector<8x32xf32>
    %455 = vector.extract_strided_slice %450 {offsets = [0, 64], sizes = [8, 32], strides = [1, 1]} : vector<8x96xf32> to vector<8x32xf32>
    %456 = arith.mulf %454, %409 : vector<8x32xf32>
    %457 = arith.mulf %453, %452 : vector<8x32xf32>
    %458 = arith.addf %456, %457 : vector<8x32xf32>
    %459 = math.tanh %458 : vector<8x32xf32>
    %460 = arith.mulf %455, %459 : vector<8x32xf32>
    %461 = vector.broadcast %437 : i32 to vector<8x32xi32>
    %462 = arith.cmpi slt, %461, %23 : vector<8x32xi32>
    %463 = arith.select %462, %460, %408 : vector<8x32xi1>, vector<8x32xf32>
    %464 = arith.select %462, %458, %409 : vector<8x32xi1>, vector<8x32xf32>
    %c8_i32 = arith.constant 8 : i32
    %465 = tpu.concatenate %435, %463 in 1 : vector<8x32xf32>, vector<8x32xf32> -> vector<8x64xf32>
    %c0_97 = arith.constant 0 : index
    %c0_98 = arith.constant 0 : index
    %466 = vector.load %arg9[%c0_97, %c0_98] : memref<64x1xf32, #tpu.memory_space<vmem>>, vector<64x1xf32>
    %cst_99 = arith.constant dense<0.000000e+00> : vector<8x1xf32>
    %467 = tpu.matmul %465, %466, %cst_99 {dimension_numbers = #tpu.dot_dimension_numbers<[1], [0], [0], [1], [0, 0, 1, 1], [], []>} : vector<8x64xf32>, vector<64x1xf32>, vector<8x1xf32> -> vector<8x1xf32>
    %c0_100 = arith.constant 0 : index
    %c0_101 = arith.constant 0 : index
    %468 = vector.load %arg10[%c0_100, %c0_101] : memref<1x1xf32, #tpu.memory_space<vmem>>, vector<1x1xf32>
    %469 = vector.broadcast %468 : vector<1x1xf32> to vector<8x1xf32>
    %470 = arith.addf %467, %469 : vector<8x1xf32>
    %471 = arith.negf %470 : vector<8x1xf32>
    %472 = math.exp %471 : vector<8x1xf32>
    %cst_102 = arith.constant 1.000000e+00 : f32
    %473 = vector.broadcast %cst_102 : f32 to vector<8x1xf32>
    %474 = arith.addf %473, %472 : vector<8x1xf32>
    %475 = arith.divf %473, %474 : vector<8x1xf32>
    %c0_103 = arith.constant 0 : index
    %c0_104 = arith.constant 0 : index
    %476 = vector.load %arg11[%c0_103, %c0_104] : memref<8x1xf32, #tpu.memory_space<vmem>>, vector<8x1xf32>
    tpu.vector_store %arg11[%c0_103, %c0_104], %475 {strides = array<i32>} : memref<8x1xf32, #tpu.memory_space<vmem>>, vector<8x1xf32>,
    return
  }
  func.func @transform_0(%arg0: i32) -> (i32, i32, i32) {
    %c0_i32 = arith.constant 0 : i32
    %c0_i32_0 = arith.constant 0 : i32
    %c0_i32_1 = arith.constant 0 : i32
    return %arg0, %c0_i32, %c0_i32_0 : i32, i32, i32
  }
  func.func @transform_1(%arg0: i32) -> (i32, i32, i32) {
    %c0_i32 = arith.constant 0 : i32
    %c0_i32_0 = arith.constant 0 : i32
    %c0_i32_1 = arith.constant 0 : i32
    return %arg0, %c0_i32, %c0_i32_0 : i32, i32, i32
  }
  func.func @transform_2(%arg0: i32) -> (i32, i32) {
    %c0_i32 = arith.constant 0 : i32
    %c0_i32_0 = arith.constant 0 : i32
    %c0_i32_1 = arith.constant 0 : i32
    return %c0_i32, %c0_i32_0 : i32, i32
  }
  func.func @transform_3(%arg0: i32) -> (i32, i32) {
    %c0_i32 = arith.constant 0 : i32
    %c0_i32_0 = arith.constant 0 : i32
    %c0_i32_1 = arith.constant 0 : i32
    return %c0_i32, %c0_i32_0 : i32, i32
  }
  func.func @transform_4(%arg0: i32) -> (i32, i32) {
    %c0_i32 = arith.constant 0 : i32
    %c0_i32_0 = arith.constant 0 : i32
    %c0_i32_1 = arith.constant 0 : i32
    return %c0_i32, %c0_i32_0 : i32, i32
  }
  func.func @transform_5(%arg0: i32) -> (i32, i32) {
    %c0_i32 = arith.constant 0 : i32
    %c0_i32_0 = arith.constant 0 : i32
    %c0_i32_1 = arith.constant 0 : i32
    return %c0_i32, %c0_i32_0 : i32, i32
  }
  func.func @transform_6(%arg0: i32) -> (i32, i32) {
    %c0_i32 = arith.constant 0 : i32
    %c0_i32_0 = arith.constant 0 : i32
    %c0_i32_1 = arith.constant 0 : i32
    return %c0_i32, %c0_i32_0 : i32, i32
  }
  func.func @transform_7(%arg0: i32) -> (i32, i32) {
    %c0_i32 = arith.constant 0 : i32
    %c0_i32_0 = arith.constant 0 : i32
    %c0_i32_1 = arith.constant 0 : i32
    return %c0_i32, %c0_i32_0 : i32, i32
  }
  func.func @transform_8(%arg0: i32) -> (i32, i32) {
    %c0_i32 = arith.constant 0 : i32
    %c0_i32_0 = arith.constant 0 : i32
    %c0_i32_1 = arith.constant 0 : i32
    return %c0_i32, %c0_i32_0 : i32, i32
  }
  func.func @transform_9(%arg0: i32) -> (i32, i32) {
    %c0_i32 = arith.constant 0 : i32
    %c0_i32_0 = arith.constant 0 : i32
    %c0_i32_1 = arith.constant 0 : i32
    return %c0_i32, %c0_i32_0 : i32, i32
  }
  func.func @transform_10(%arg0: i32) -> (i32, i32) {
    %c0_i32 = arith.constant 0 : i32
    %c0_i32_0 = arith.constant 0 : i32
    return %arg0, %c0_i32 : i32, i32
  }
}

</mosaic_0001>

<bundles_post_ra>
// kernel: tpu_custom_call.1
= control target key start
LH: loop header
LB: loop body
LE: loop exit
PB: predicated region body
PF: predicated region fallthrough
CT: control target
= control target key end

     0   :  { %v2171_v1 = vmov 0   ;;  %vm89_vm0 = vcmask 261120   ;;  %v2172_v9 = vmov 0.0   ;;  %vm2173_vm1 = vmmov 0   ;;  %s2776_s2 = inlined_call_operand.vmem [shape: bf16[32,128], index: 2, kind: input, shape index: {}]   ;;  %s2777_s0 = inlined_call_operand.vmem [shape: bf16[1,64,32], index: 0, kind: input, shape index: {}]   ;;  %s2778_s5 = inlined_call_operand.vmem [shape: bf16[32,128], index: 5, kind: input, shape index: {}]   ;;  %s2779_s3 = inlined_call_operand.vmem [shape: bf16[32,128], index: 3, kind: input, shape index: {}]   ;;  %s2780_s6 = inlined_call_operand.vmem [shape: bf16[32,128], index: 6, kind: input, shape index: {}]   ;;  %s2781_s4 = inlined_call_operand.vmem [shape: f32[1,128], index: 4, kind: input, shape index: {}]   ;;  %s2782_s7 = inlined_call_operand.vmem [shape: f32[1,128], index: 7, kind: input, shape index: {}]   ;;  %s2783_s1 = inlined_call_operand.vmem [shape: s32[1,8,1], index: 1, kind: input, shape index: {}]   ;;  %s2784_s8 = inlined_call_operand.vmem [shape: f32[64,1], index: 8, kind: input, shape index: {}]   ;;  %s2785_s9 = inlined_call_operand.<no memory space> [shape: f32[1,1], index: 9, kind: input, shape index: {}]   ;;  %s2786_s10 = inlined_call_operand.vmem [shape: f32[8,1], index: 10, kind: output, shape index: {}]  }
   0x1   :  { %v2023_v0 = vld [vmem:[%s2776_s2] sm:$0xff]   ;;  %2022 = vset.pattern.permute.xlu0 %v2171_v1  ;;  %v2024_v2 = vld [vmem:[%s2776_s2 + $0x8] sm:$0xff]   ;;  %v2026_v4 = vld [vmem:[%s2777_s0 + $0x10] sm:$0xff]   ;;  %vm1572_vm10 = vcmask 523264   ;;  %vm1652_vm11 = vcmask 7168  }
   0x2   :  { %1828 = vmatprep.subr.bf16.mxu0 %v2023_v0  ;;  %2011 = vmatprep.subr.bf16.mxu1 %v2023_v0  ;;  %v2025_v3 = vld [vmem:[%s2777_s0] sm:$0xff]   ;;  %v2027_v5 = vld [vmem:[%s2777_s0 + $0x8] sm:$0xff]   ;;  %v2028_v6 = vld [vmem:[%s2777_s0 + $0x18] sm:$0xff]  }
   0x3   :  { %1829 = vmatpush3.bf16.msra.mxu0 %v2023_v0  ;;  %2013 = vmatpush3.bf16.msra.mxu1 %v2023_v0  ;;  %v2029_v7 = vld [vmem:[%s2778_s5] sm:$0xff]   ;;  %v2030_v8 = vld [vmem:[%s2778_s5 + $0x8] sm:$0xff]  }
   0x4   :  { %1830 = vmatprep.subr.bf16.mxu0 %v2024_v2  ;;  %2012 = vmatprep.subr.bf16.mxu1 %v2024_v2  ;;  %v2263_v10 = vld [vmem:[%s2779_s3] sm:$0xff]   ;;  %v2272_v11 = vld [vmem:[%s2779_s3 + $0x8] sm:$0xff]  }
   0x5   :  { %1832 = vmatprep.mubr.msk.bf16.mxu0 %vm89_vm0, %v2025_v3  ;;  %1836 = vmatprep.mubr.msk.bf16.mxu1 %vm89_vm0, %v2026_v4  ;;  %v2282_v12 = vld [vmem:[%s2780_s6] sm:$0xff]   ;;  %v2291_v13 = vld [vmem:[%s2780_s6 + $0x8] sm:$0xff]  }
   0x6   :  { %v1658_v15 = vld [vmem:[%s2781_s4] ss:$0 sm:$0xff] }
   0x7   :  { %1831 = vmatpush3.bf16.msra.mxu0 %v2024_v2  ;;  %2014 = vmatpush3.bf16.msra.mxu1 %v2024_v2  ;;  %v1669_v36 = vld [vmem:[%s2782_s7] ss:$0 sm:$0xff]  ;;  %s2174_s7 = smov 32  }
   0x8   :  { %1840 = vmatprep.subr.bf16.mxu1 %v2029_v7  ;;  %1852 = vmatprep.subr.bf16.mxu0 %v2172_v9 }
   0xa   :  { %1833 = vmatmul.mubr.msk.bf16.vlgmr.msra.gmra.mrb[0].mxu0 %vm89_vm0, %v2027_v5  ;;  %1837 = vmatmul.mubr.msk.bf16.vlgmr.msra.gmra.mrb[0].mxu1 %vm89_vm0, %v2028_v6 }
   0xb   :  { %1841 = vmatpush3.bf16.msra.mxu1 %v2029_v7  ;;  %1844 = vmatprep.mubr.msk.bf16.mxu1 %vm89_vm0, %v2025_v3 }
   0xc   :  { %1842 = vmatprep.subr.bf16.mxu1 %v2030_v8  ;;  %1853 = vmatpush3.bf16.msra.mxu0 %v2263_v10 }
   0xd   :  { %1854 = vmatprep.subr.bf16.mxu0 %v2172_v9  ;;  %1856 = vmatprep.mubr.msk.bf16.mxu0 %vm2173_vm1, %v2172_v9 }
   0xf   :  { %1843 = vmatpush3.bf16.msra.mxu1 %v2030_v8  ;;  %v295_v8 = vld [vmem:[%s2783_s1] sm:$0xff]  ;;  %s2175_s1 = smov 64  }
  0x10   :  { %1855 = vmatpush3.bf16.msra.mxu0 %v2272_v11  ;;  %1860 = vmatprep.subr.bf16.mxu1 %v2172_v9 }
  0x11   :  { %1868 = vmatprep.subr.bf16.mxu0 %v2172_v9 }
  0x12   :  { %1845 = vmatmul.mubr.msk.bf16.vlgmr.msra.gmra.mrb[4].mxu1 %vm89_vm0, %v2027_v5 }
  0x13   :  { %1848 = vmatprep.mubr.msk.bf16.mxu1 %vm89_vm0, %v2026_v4  ;;  %1857 = vmatmul.mubr.bf16.vlgmr.msra.gmra.mrb[4].mxu0 %v2171_v1 }
  0x14   :  { %1861 = vmatpush3.bf16.msra.mxu1 %v2282_v12  ;;  %1869 = vmatpush3.bf16.msra.mxu0 %v2263_v10 }
  0x15   :  { %1862 = vmatprep.subr.bf16.mxu1 %v2172_v9  ;;  %1870 = vmatprep.subr.bf16.mxu0 %v2172_v9 }
  0x16   :  { %1872 = vmatprep.mubr.msk.bf16.mxu0 %vm2173_vm1, %v2172_v9 }
  0x18   :  { %1863 = vmatpush3.bf16.msra.mxu1 %v2291_v13  ;;  %1871 = vmatpush3.bf16.msra.mxu0 %v2272_v11 }
  0x19   :  { %1876 = vmatprep.subr.bf16.mxu1 %v2172_v9  ;;  %1884 = vmatprep.subr.bf16.mxu0 %v2172_v9 }
  0x1a   :  { %1849 = vmatmul.mubr.msk.bf16.gmra.mrb[8].mxu1 %vm89_vm0, %v2028_v6 }
  0x1b   :  { %1864 = vmatprep.mubr.msk.bf16.mxu1 %vm2173_vm1, %v2172_v9 }
  0x22   :  { %1865 = vmatmul.mubr.bf16.vlgmr.msra.gmra.mrb[12].mxu1 %v2171_v1 }
  0x23   :  { %1877 = vmatpush3.bf16.msra.mxu1 %v2282_v12  ;;  %1880 = vmatprep.mubr.msk.bf16.mxu1 %vm2173_vm1, %v2172_v9 }
  0x24   :  { %1878 = vmatprep.subr.bf16.mxu1 %v2172_v9 }
  0x27   :  { %1879 = vmatpush3.bf16.msra.mxu1 %v2291_v13 }
  0x28   :  { %1892 = vmatprep.subr.bf16.mxu1 %v2172_v9 }
  0xdd   :  { %v1834_v14 = vpop.f32.mrb[0].mxu0  ;;  %v1838_v16 = vpop.f32.mrb[0].mxu1 }
  0xde   :  { %v145_v17 = vadd.f32 %v1834_v14, %v1658_v15  ;;  %v136_v18 = vpop.f32.mrb[1].mxu0  ;;  %v152_v19 = vpop.f32.mrb[1].mxu1  ;;  %v161_v23 = vadd.f32 %v1838_v16, %v1658_v15 }
  0xdf   :  { %v137_v20 = vadd.f32 %v1658_v15, %v136_v18  ;;  %v1835_v21 = vpop.f32.mrb[2].mxu0  ;;  %v1839_v22 = vpop.f32.mrb[2].mxu1  ;;  %v153_v28 = vadd.f32 %v1658_v15, %v152_v19 }
  0xe0   :  { %v148_v24 = vadd.f32 %v1835_v21, %v1658_v15  ;;  %v164_v25 = vadd.f32 %v1839_v22, %v1658_v15  ;;  %v139_v26 = vpop.f32.mrb[3].mxu0  ;;  %v155_v27 = vpop.f32.mrb[3].mxu1 }
  0xe1   :  { %v140_v29 = vadd.f32 %v1658_v15, %v139_v26  ;;  %v156_v30 = vadd.f32 %v1658_v15, %v155_v27 }
  0xe2   :  { %v1721_v31 = vpack.c.bf16 %v148_v24, %v145_v17  ;;  %v1731_v32 = vpack.c.bf16 %v164_v25, %v161_v23 }
  0xe3   :  { %v1716_v33 = vpack.c.bf16 %v140_v29, %v137_v20  ;;  %v1726_v34 = vpack.c.bf16 %v156_v30, %v153_v28 }
  0xe4   :  { %1753 = vst [vmem:[#allocation2 + $0x8] sm:$0xff] %v1721_v31   ;;  %1755 = vst [vmem:[#allocation2 + $0x18] sm:$0xff] %v1731_v32  }
  0xe5   :  { %1717 = vst [vmem:[#allocation2] sm:$0xff] %v1716_v33   ;;  %1754 = vst [vmem:[#allocation2 + $0x10] sm:$0xff] %v1726_v34   ;;  %v1846_v35 = vpop.f32.mrb[4].mxu1 }
  0xe6   :  { %v224_v37 = vpop.f32.mrb[5].mxu1  ;;  %v350_v38 = vpop.f32.mrb[4].mxu0  ;;  %v233_v41 = vadd.f32 %v1846_v35, %v1669_v36 }
  0xe7   :  { %v1847_v39 = vpop.f32.mrb[6].mxu1  ;;  %v1858_v40 = vpop.f32.mrb[5].mxu0  ;;  %v225_v45 = vadd.f32 %v1669_v36, %v224_v37 }
  0xe8   :  { %v236_v42 = vadd.f32 %v1847_v39, %v1669_v36  ;;  %v227_v43 = vpop.f32.mrb[7].mxu1  ;;  %v353_v44 = vpop.f32.mrb[6].mxu0 }
  0xe9   :  { %v228_v46 = vadd.f32 %v1669_v36, %v227_v43  ;;  %v1859_v47 = vpop.f32.mrb[7].mxu0 }
  0xea   :  { %v1741_v48 = vpack.c.bf16 %v236_v42, %v233_v41 }
  0xeb   :  { %v1736_v49 = vpack.c.bf16 %v228_v46, %v225_v45 }
  0xec   :  { %1756 = vst [vmem:[#allocation3 + $0x8] sm:$0xff] %v1741_v48   ;;  %v299_v50 = vld [vmem:[#allocation2] sm:$0xf]  ;;  %v2364_v45 = vld [vmem:[#allocation2 + $0x4] sm:$0xff]  }
  0xed   :  { %1737 = vst [vmem:[#allocation3] sm:$0xff] %v1736_v49   ;;  %v1850_v51 = vpop.f32.mrb[8].mxu1  ;;  %v300_v52 = vunpack.c.l.bf16 %v299_v50  ;;  %v469_v46 = vunpack.c.l.bf16 %v2364_v45 }
  0xee   :  { %v240_v53 = vpop.f32.mrb[9].mxu1  ;;  %v249_v56 = vadd.f32 %v1850_v51, %v1669_v36 }
  0xef   :  { %v356_v54 = vadd.f32 %v350_v38, %v300_v52  ;;  %v1851_v55 = vpop.f32.mrb[10].mxu1  ;;  %v241_v59 = vadd.f32 %v1669_v36, %v240_v53 }
  0xf0   :  { %v252_v57 = vadd.f32 %v1851_v55, %v1669_v36  ;;  %v243_v58 = vpop.f32.mrb[11].mxu1 }
  0xf1   :  { %2035 = vtanh.f32 %v356_v54  ;;  %v244_v60 = vadd.f32 %v1669_v36, %v243_v58  ;;  %v1678_v14 = vmul.f32 -1.442695, %v356_v54 }
  0xf2   :  { %v1751_v61 = vpack.c.bf16 %v252_v57, %v249_v56 }
  0xf3   :  { %v1746_v62 = vpack.c.bf16 %v244_v60, %v241_v59 }
  0xf4   :  { %1758 = vst [vmem:[#allocation3 + $0x18] sm:$0xff] %v1751_v61  }
  0xf5   :  { %1757 = vst [vmem:[#allocation3 + $0x10] sm:$0xff] %v1746_v62   ;;  %v433_v63 = vpop.f32.mrb[12].mxu1 }
  0xf6   :  { %v1866_v0 = vpop.f32.mrb[13].mxu1 }
  0xf7   :  { %v436_v1 = vpop.f32.mrb[14].mxu1 }
  0xf8   :  { %v1867_v2 = vpop.f32.mrb[15].mxu1 }
  0xfb   :  { %v2036_v3 = vpop.eup %2035  ;;  %v385_v4 = vld [vmem:[#allocation3 + $0x1c] sm:$0xf] }
  0xfc   :  { %v386_v5 = vunpack.c.l.bf16 %v385_v4  ;;  %366 = vrot.lane.b32.xlu0 %v2036_v3, %s2174_s7  ;;  %v2367_v52 = vld [vmem:[#allocation3 + $0x14] sm:$0xff]  }
  0xfd   :  { %v547_v54 = vunpack.c.h.bf16 %v2367_v52 }
  0xfe   :  { %v439_v6 = vadd.f32 %v433_v63, %v386_v5 }
 0x100   :  { %2037 = vtanh.f32 %v439_v6  ;;  %v1681_v16 = vmul.f32 -1.442695, %v439_v6 }
 0x101   :  { %2039 = vpow2.f32 %v1678_v14 }
 0x102   :  { %2041 = vpow2.f32 %v1681_v16 }
 0x10a   :  { %v2038_v7 = vpop.eup %2037 }
 0x10b   :  { %449 = vrot.lane.b32.xlu0 %v2038_v7, %s2174_s7  ;;  %v2040_v15 = vpop.eup %2039 }
 0x10c   :  { %v360_v17 = vadd.f32 1.0, %v2040_v15  ;;  %v2042_v18 = vpop.eup %2041 }
 0x10d   :  { %v443_v22 = vadd.f32 1.0, %v2042_v18 }
 0x10e   :  { %2043 = vrcp.f32 %v360_v17 }
 0x10f   :  { %297 = vperm.xlu0 %2022, %v295_v8   ;;  %2045 = vrcp.f32 %v443_v22 }
 0x118   :  { %v2044_v19 = vpop.eup %2043 }
 0x119   :  { %v2046_v23 = vpop.eup %2045  ;;  %v364_v26 = vmul.f32 0.0, %v2044_v19 }
 0x11a   :  { %v447_v30 = vmul.f32 0.0, %v2046_v23 }
 0x16e   :  { %v367_v20 = vpop.permute.xlu0 %366 }
 0x16f   :  { %v369_v21 = vmul.f32 %v2044_v19, %v367_v20 }
 0x171   :  { %371 = vrot.lane.b32.xlu1 %v369_v21, %s2174_s7 }
 0x17d   :  { %v450_v24 = vpop.permute.xlu0 %449 }
 0x17e   :  { %v452_v25 = vmul.f32 %v2046_v23, %v450_v24 }
 0x180   :  { %454 = vrot.lane.b32.xlu1 %v452_v25, %s2174_s7 }
 0x18e   :  { %v2332_v34 = vpop.permute.xlu0 %297 }
 0x18f   :  { %vm381_vm2 = vcmp.gt.s32.totalorder %v2332_v34, 0  ;;  %vm464_vm3 = vcmp.gt.s32.totalorder %v2332_v34, 7  ;;  %vm542_vm4 = vcmp.gt.s32.totalorder %v2332_v34, 1  ;;  %vm620_vm5 = vcmp.gt.s32.totalorder %v2332_v34, 6 }
 0x190   :  { %vm698_vm6 = vcmp.gt.s32.totalorder %v2332_v34, 2  ;;  %vm776_vm7 = vcmp.gt.s32.totalorder %v2332_v34, 5  ;;  %vm854_vm8 = vcmp.gt.s32.totalorder %v2332_v34, 3  ;;  %vm932_vm9 = vcmp.gt.s32.totalorder %v2332_v34, 4 }
 0x1e3   :  { %v372_v27 = vpop.permute.xlu1 %371 }
 0x1e4   :  { %v2324_v28 = vadd.f32 %v372_v27, %v364_v26 }
 0x1e6   :  { %2047 = vtanh.f32 %v2324_v28  ;;  %v2377_v14 = vsel %vm381_vm2, %v2324_v28, 0.0 }
 0x1f0   :  { %v2048_v29 = vpop.eup %2047 }
 0x1f1   :  { %377 = vrot.lane.b32.xlu1 %v2048_v29, %s2174_s7 }
 0x1f2   :  { %v455_v31 = vpop.permute.xlu1 %454 }
 0x1f3   :  { %v2328_v32 = vadd.f32 %v455_v31, %v447_v30 }
 0x1f5   :  { %2049 = vtanh.f32 %v2328_v32 }
 0x1ff   :  { %v2050_v33 = vpop.eup %2049 }
 0x200   :  { %460 = vrot.lane.b32.xlu1 %v2050_v33, %s2174_s7 }
 0x263   :  { %v378_v35 = vpop.permute.xlu1 %377 }
 0x264   :  { %v380_v36 = vmul.f32 %v2044_v19, %v378_v35  ;;  %v2386_v19 = vsel %vm464_vm3, %v2328_v32, 0.0  ;;  %v625_v35 = vunpack.c.h.bf16 %v2364_v45 }
 0x266   :  { %v2337_v37 = vsel %vm381_vm2, %v380_v36, 0.0 }
 0x267   :  { %v470_v38 = vpack.c.bf16 %v2337_v37, %v2337_v37 }
 0x269   :  { %472 = vrot.lane.b32.xlu0 %v470_v38, %s2175_s1 }
 0x272   :  { %v461_v39 = vpop.permute.xlu1 %460 }
 0x273   :  { %v463_v40 = vmul.f32 %v2046_v23, %v461_v39 }
 0x275   :  { %v2345_v41 = vsel %vm464_vm3, %v463_v40, 0.0 }
 0x276   :  { %v548_v42 = vpack.c.bf16 %v2345_v41, %v2345_v41 }
 0x278   :  { %550 = vrot.lane.b32.xlu1 %v548_v42, %s2175_s1  ;;  %v703_v42 = vunpack.c.l.bf16 %v2367_v52 }
 0x2db   :  { %v473_v43 = vpop.permute.xlu0 %472 }
 0x2dc   :  { %1873 = vmatmul.mubr.msk.bf16.vlgmr.msra.gmra.mrb[8].mxu0 %vm89_vm0, %v473_v43 }
 0x2dd   :  { %1885 = vmatpush3.bf16.msra.mxu0 %v2263_v10  ;;  %1888 = vmatprep.mubr.msk.bf16.mxu0 %vm2173_vm1, %v2172_v9 }
 0x2de   :  { %1886 = vmatprep.subr.bf16.mxu0 %v2172_v9 }
 0x2e1   :  { %1887 = vmatpush3.bf16.msra.mxu0 %v2272_v11 }
 0x2e2   :  { %1900 = vmatprep.subr.bf16.mxu0 %v2172_v9 }
 0x2ea   :  { %v551_v44 = vpop.permute.xlu1 %550 }
 0x2eb   :  { %1881 = vmatmul.mubr.msk.bf16.vlgmr.msra.gmra.mrb[16].mxu1 %vm89_vm0, %v551_v44 }
 0x2ec   :  { %1893 = vmatpush3.bf16.msra.mxu1 %v2282_v12  ;;  %1896 = vmatprep.mubr.msk.bf16.mxu1 %vm2173_vm1, %v2172_v9 }
 0x2ed   :  { %1894 = vmatprep.subr.bf16.mxu1 %v2172_v9 }
 0x2f0   :  { %1895 = vmatpush3.bf16.msra.mxu1 %v2291_v13 }
 0x2f1   :  { %1908 = vmatprep.subr.bf16.mxu1 %v2172_v9 }
 0x3af   :  { %v511_v47 = vpop.f32.mrb[8].mxu0 }
 0x3b0   :  { %v517_v48 = vadd.f32 %v511_v47, %v469_v46  ;;  %v1874_v49 = vpop.f32.mrb[9].mxu0 }
 0x3b1   :  { %v514_v50 = vpop.f32.mrb[10].mxu0 }
 0x3b2   :  { %2051 = vtanh.f32 %v517_v48  ;;  %v1875_v51 = vpop.f32.mrb[11].mxu0  ;;  %v1683_v61 = vmul.f32 -1.442695, %v517_v48 }
 0x3bc   :  { %v2052_v53 = vpop.eup %2051 }
 0x3bd   :  { %527 = vrot.lane.b32.xlu0 %v2052_v53, %s2174_s7 }
 0x3be   :  { %v589_v55 = vpop.f32.mrb[16].mxu1 }
 0x3bf   :  { %v595_v56 = vadd.f32 %v589_v55, %v547_v54  ;;  %v1882_v57 = vpop.f32.mrb[17].mxu1 }
 0x3c0   :  { %v592_v58 = vpop.f32.mrb[18].mxu1 }
 0x3c1   :  { %2053 = vtanh.f32 %v595_v56  ;;  %v1883_v59 = vpop.f32.mrb[19].mxu1  ;;  %v1685_v63 = vmul.f32 -1.442695, %v595_v56 }
 0x3c2   :  { %2055 = vpow2.f32 %v1683_v61 }
 0x3c3   :  { %2057 = vpow2.f32 %v1685_v63 }
 0x3cb   :  { %v2054_v60 = vpop.eup %2053 }
 0x3cc   :  { %605 = vrot.lane.b32.xlu1 %v2054_v60, %s2174_s7  ;;  %v2056_v62 = vpop.eup %2055 }
 0x3cd   :  { %v521_v0 = vadd.f32 1.0, %v2056_v62  ;;  %v2058_v1 = vpop.eup %2057 }
 0x3ce   :  { %v599_v5 = vadd.f32 1.0, %v2058_v1 }
 0x3cf   :  { %2059 = vrcp.f32 %v521_v0 }
 0x3d0   :  { %2061 = vrcp.f32 %v599_v5 }
 0x3d9   :  { %v2060_v2 = vpop.eup %2059 }
 0x3da   :  { %v2062_v6 = vpop.eup %2061  ;;  %v525_v15 = vmul.f32 %v2060_v2, %v2377_v14 }
 0x3db   :  { %v603_v20 = vmul.f32 %v2062_v6, %v2386_v19 }
 0x42f   :  { %v528_v3 = vpop.permute.xlu0 %527 }
 0x430   :  { %v530_v4 = vmul.f32 %v2060_v2, %v528_v3 }
 0x432   :  { %532 = vrot.lane.b32.xlu0 %v530_v4, %s2174_s7 }
 0x43e   :  { %v606_v7 = vpop.permute.xlu1 %605 }
 0x43f   :  { %v608_v8 = vmul.f32 %v2062_v6, %v606_v7 }
 0x441   :  { %610 = vrot.lane.b32.xlu1 %v608_v8, %s2174_s7 }
 0x4a4   :  { %v533_v16 = vpop.permute.xlu0 %532 }
 0x4a5   :  { %v2380_v17 = vadd.f32 %v533_v16, %v525_v15 }
 0x4a7   :  { %2063 = vtanh.f32 %v2380_v17  ;;  %v2436_v61 = vsel %vm542_vm4, %v2380_v17, %v2377_v14 }
 0x4b1   :  { %v2064_v18 = vpop.eup %2063 }
 0x4b2   :  { %538 = vrot.lane.b32.xlu0 %v2064_v18, %s2174_s7 }
 0x4b3   :  { %v611_v21 = vpop.permute.xlu1 %610 }
 0x4b4   :  { %v2390_v22 = vadd.f32 %v611_v21, %v603_v20 }
 0x4b6   :  { %2065 = vtanh.f32 %v2390_v22 }
 0x4c0   :  { %v2066_v23 = vpop.eup %2065 }
 0x4c1   :  { %616 = vrot.lane.b32.xlu1 %v2066_v23, %s2174_s7 }
 0x524   :  { %v539_v24 = vpop.permute.xlu0 %538 }
 0x525   :  { %v541_v25 = vmul.f32 %v2060_v2, %v539_v24  ;;  %v2447_v2 = vsel %vm620_vm5, %v2390_v22, %v2386_v19  ;;  %v2486_v22 = vld [vmem:[#allocation2 + $0xc] sm:$0xff]  }
 0x526   :  { %v781_v23 = vunpack.c.l.bf16 %v2486_v22 }
 0x527   :  { %v2398_v26 = vsel %vm542_vm4, %v541_v25, %v2337_v37 }
 0x528   :  { %v626_v27 = vpack.c.bf16 %v2398_v26, %v2398_v26 }
 0x52a   :  { %628 = vrot.lane.b32.xlu0 %v626_v27, %s2175_s1 }
 0x533   :  { %v617_v28 = vpop.permute.xlu1 %616 }
 0x534   :  { %v619_v29 = vmul.f32 %v2062_v6, %v617_v28 }
 0x536   :  { %v2407_v30 = vsel %vm620_vm5, %v619_v29, %v2345_v41  ;;  %v2489_v29 = vld [vmem:[#allocation3 + $0xc] sm:$0xff]  }
 0x537   :  { %v704_v31 = vpack.c.bf16 %v2407_v30, %v2407_v30 }
 0x539   :  { %706 = vrot.lane.b32.xlu1 %v704_v31, %s2175_s1  ;;  %v859_v31 = vunpack.c.h.bf16 %v2489_v29 }
 0x59c   :  { %v629_v32 = vpop.permute.xlu0 %628 }
 0x59d   :  { %1889 = vmatmul.mubr.msk.bf16.vlgmr.msra.gmra.mrb[12].mxu0 %vm89_vm0, %v629_v32 }
 0x59e   :  { %1901 = vmatpush3.bf16.msra.mxu0 %v2263_v10  ;;  %1904 = vmatprep.mubr.msk.bf16.mxu0 %vm2173_vm1, %v2172_v9 }
 0x59f   :  { %1902 = vmatprep.subr.bf16.mxu0 %v2172_v9 }
 0x5a2   :  { %1903 = vmatpush3.bf16.msra.mxu0 %v2272_v11 }
 0x5a3   :  { %1916 = vmatprep.subr.bf16.mxu0 %v2172_v9 }
 0x5ab   :  { %v707_v33 = vpop.permute.xlu1 %706 }
 0x5ac   :  { %1897 = vmatmul.mubr.msk.bf16.vlgmr.msra.gmra.mrb[20].mxu1 %vm89_vm0, %v707_v33 }
 0x5ad   :  { %1909 = vmatpush3.bf16.msra.mxu1 %v2282_v12  ;;  %1912 = vmatprep.mubr.msk.bf16.mxu1 %vm2173_vm1, %v2172_v9 }
 0x5ae   :  { %1910 = vmatprep.subr.bf16.mxu1 %v2172_v9 }
 0x5b1   :  { %1911 = vmatpush3.bf16.msra.mxu1 %v2291_v13 }
 0x5b2   :  { %1924 = vmatprep.subr.bf16.mxu1 %v2172_v9 }
 0x670   :  { %v667_v36 = vpop.f32.mrb[12].mxu0 }
 0x671   :  { %v673_v37 = vadd.f32 %v667_v36, %v625_v35  ;;  %v1890_v38 = vpop.f32.mrb[13].mxu0 }
 0x672   :  { %v670_v39 = vpop.f32.mrb[14].mxu0 }
 0x673   :  { %2067 = vtanh.f32 %v673_v37  ;;  %v1891_v40 = vpop.f32.mrb[15].mxu0  ;;  %v1687_v45 = vmul.f32 -1.442695, %v673_v37 }
 0x67d   :  { %v2068_v41 = vpop.eup %2067 }
 0x67e   :  { %683 = vrot.lane.b32.xlu0 %v2068_v41, %s2174_s7 }
 0x67f   :  { %v745_v43 = vpop.f32.mrb[20].mxu1 }
 0x680   :  { %v751_v44 = vadd.f32 %v745_v43, %v703_v42  ;;  %v1898_v46 = vpop.f32.mrb[21].mxu1 }
 0x681   :  { %v748_v47 = vpop.f32.mrb[22].mxu1 }
 0x682   :  { %2069 = vtanh.f32 %v751_v44  ;;  %v1899_v48 = vpop.f32.mrb[23].mxu1  ;;  %v1689_v51 = vmul.f32 -1.442695, %v751_v44 }
 0x683   :  { %2071 = vpow2.f32 %v1687_v45 }
 0x684   :  { %2073 = vpow2.f32 %v1689_v51 }
 0x68c   :  { %v2070_v49 = vpop.eup %2069 }
 0x68d   :  { %761 = vrot.lane.b32.xlu1 %v2070_v49, %s2174_s7  ;;  %v2072_v50 = vpop.eup %2071 }
 0x68e   :  { %v677_v53 = vadd.f32 1.0, %v2072_v50  ;;  %v2074_v54 = vpop.eup %2073 }
 0x68f   :  { %v755_v57 = vadd.f32 1.0, %v2074_v54 }
 0x690   :  { %2075 = vrcp.f32 %v677_v53 }
 0x691   :  { %2077 = vrcp.f32 %v755_v57 }
 0x69a   :  { %v2076_v55 = vpop.eup %2075 }
 0x69b   :  { %v2078_v58 = vpop.eup %2077  ;;  %v681_v62 = vmul.f32 %v2076_v55, %v2436_v61 }
 0x69c   :  { %v759_v3 = vmul.f32 %v2078_v58, %v2447_v2 }
 0x6f0   :  { %v684_v56 = vpop.permute.xlu0 %683 }
 0x6f1   :  { %v686_v52 = vmul.f32 %v2076_v55, %v684_v56 }
 0x6f3   :  { %688 = vrot.lane.b32.xlu0 %v686_v52, %s2174_s7 }
 0x6ff   :  { %v762_v59 = vpop.permute.xlu1 %761 }
 0x700   :  { %v764_v60 = vmul.f32 %v2078_v58, %v762_v59 }
 0x702   :  { %766 = vrot.lane.b32.xlu1 %v764_v60, %s2174_s7 }
 0x765   :  { %v689_v63 = vpop.permute.xlu0 %688 }
 0x766   :  { %v2439_v0 = vadd.f32 %v689_v63, %v681_v62 }
 0x768   :  { %2079 = vtanh.f32 %v2439_v0  ;;  %v2500_v51 = vsel %vm698_vm6, %v2439_v0, %v2436_v61 }
 0x772   :  { %v2080_v1 = vpop.eup %2079 }
 0x773   :  { %694 = vrot.lane.b32.xlu0 %v2080_v1, %s2174_s7 }
 0x774   :  { %v767_v4 = vpop.permute.xlu1 %766 }
 0x775   :  { %v2450_v5 = vadd.f32 %v767_v4, %v759_v3 }
 0x777   :  { %2081 = vtanh.f32 %v2450_v5  ;;  %v2511_v52 = vsel %vm776_vm7, %v2450_v5, %v2447_v2 }
 0x781   :  { %v2082_v6 = vpop.eup %2081 }
 0x782   :  { %772 = vrot.lane.b32.xlu1 %v2082_v6, %s2174_s7 }
 0x7e5   :  { %v695_v7 = vpop.permute.xlu0 %694 }
 0x7e6   :  { %v697_v8 = vmul.f32 %v2076_v55, %v695_v7  ;;  %v937_v7 = vunpack.c.h.bf16 %v2486_v22 }
 0x7e8   :  { %v2458_v14 = vsel %vm698_vm6, %v697_v8, %v2398_v26 }
 0x7e9   :  { %v782_v15 = vpack.c.bf16 %v2458_v14, %v2458_v14 }
 0x7eb   :  { %784 = vrot.lane.b32.xlu0 %v782_v15, %s2175_s1 }
 0x7f4   :  { %v773_v16 = vpop.permute.xlu1 %772 }
 0x7f5   :  { %v775_v17 = vmul.f32 %v2078_v58, %v773_v16 }
 0x7f7   :  { %v2467_v18 = vsel %vm776_vm7, %v775_v17, %v2407_v30 }
 0x7f8   :  { %v860_v19 = vpack.c.bf16 %v2467_v18, %v2467_v18 }
 0x7fa   :  { %862 = vrot.lane.b32.xlu1 %v860_v19, %s2175_s1  ;;  %v1014_v19 = vunpack.c.l.bf16 %v2489_v29 }
 0x85d   :  { %v785_v20 = vpop.permute.xlu0 %784 }
 0x85e   :  { %1905 = vmatmul.mubr.msk.bf16.vlgmr.msra.gmra.mrb[16].mxu0 %vm89_vm0, %v785_v20 }
 0x85f   :  { %1917 = vmatpush3.bf16.msra.mxu0 %v2263_v10  ;;  %1920 = vmatprep.mubr.msk.bf16.mxu0 %vm2173_vm1, %v2172_v9 }
 0x860   :  { %1918 = vmatprep.subr.bf16.mxu0 %v2172_v9 }
 0x863   :  { %1919 = vmatpush3.bf16.msra.mxu0 %v2272_v11 }
 0x864   :  { %1932 = vmatprep.subr.bf16.mxu0 %v2172_v9 }
 0x86c   :  { %v863_v21 = vpop.permute.xlu1 %862 }
 0x86d   :  { %1913 = vmatmul.mubr.msk.bf16.vlgmr.msra.gmra.mrb[24].mxu1 %vm89_vm0, %v863_v21 }
 0x86e   :  { %1925 = vmatpush3.bf16.msra.mxu1 %v2282_v12  ;;  %1928 = vmatprep.mubr.msk.bf16.mxu1 %vm2173_vm1, %v2172_v9 }
 0x86f   :  { %1926 = vmatprep.subr.bf16.mxu1 %v2172_v9 }
 0x872   :  { %1927 = vmatpush3.bf16.msra.mxu1 %v2291_v13 }
 0x873   :  { %1940 = vmatprep.subr.bf16.mxu1 %v2172_v9 }
 0x931   :  { %v823_v24 = vpop.f32.mrb[16].mxu0 }
 0x932   :  { %v829_v25 = vadd.f32 %v823_v24, %v781_v23  ;;  %v1906_v26 = vpop.f32.mrb[17].mxu0 }
 0x933   :  { %v826_v27 = vpop.f32.mrb[18].mxu0 }
 0x934   :  { %2083 = vtanh.f32 %v829_v25  ;;  %v1907_v28 = vpop.f32.mrb[19].mxu0  ;;  %v1691_v39 = vmul.f32 -1.442695, %v829_v25 }
 0x93e   :  { %v2084_v30 = vpop.eup %2083 }
 0x93f   :  { %839 = vrot.lane.b32.xlu0 %v2084_v30, %s2174_s7 }
 0x940   :  { %v901_v32 = vpop.f32.mrb[24].mxu1 }
 0x941   :  { %v907_v33 = vadd.f32 %v901_v32, %v859_v31  ;;  %v1914_v35 = vpop.f32.mrb[25].mxu1 }
 0x942   :  { %v904_v36 = vpop.f32.mrb[26].mxu1 }
 0x943   :  { %2085 = vtanh.f32 %v907_v33  ;;  %v1915_v37 = vpop.f32.mrb[27].mxu1  ;;  %v1693_v41 = vmul.f32 -1.442695, %v907_v33 }
 0x944   :  { %2087 = vpow2.f32 %v1691_v39 }
 0x945   :  { %2089 = vpow2.f32 %v1693_v41 }
 0x94d   :  { %v2086_v38 = vpop.eup %2085 }
 0x94e   :  { %917 = vrot.lane.b32.xlu1 %v2086_v38, %s2174_s7  ;;  %v2088_v40 = vpop.eup %2087 }
 0x94f   :  { %v833_v42 = vadd.f32 1.0, %v2088_v40  ;;  %v2090_v43 = vpop.eup %2089 }
 0x950   :  { %v911_v48 = vadd.f32 1.0, %v2090_v43 }
 0x951   :  { %2091 = vrcp.f32 %v833_v42 }
 0x952   :  { %2093 = vrcp.f32 %v911_v48 }
 0x95b   :  { %v2092_v44 = vpop.eup %2091 }
 0x95c   :  { %v2094_v49 = vpop.eup %2093  ;;  %v837_v53 = vmul.f32 %v2092_v44, %v2500_v51 }
 0x95d   :  { %v915_v57 = vmul.f32 %v2094_v49, %v2511_v52 }
 0x9b1   :  { %v840_v46 = vpop.permute.xlu0 %839 }
 0x9b2   :  { %v842_v47 = vmul.f32 %v2092_v44, %v840_v46 }
 0x9b4   :  { %844 = vrot.lane.b32.xlu0 %v842_v47, %s2174_s7 }
 0x9c0   :  { %v918_v45 = vpop.permute.xlu1 %917 }
 0x9c1   :  { %v920_v50 = vmul.f32 %v2094_v49, %v918_v45 }
 0x9c3   :  { %922 = vrot.lane.b32.xlu1 %v920_v50, %s2174_s7 }
 0xa26   :  { %v845_v54 = vpop.permute.xlu0 %844 }
 0xa27   :  { %v2503_v55 = vadd.f32 %v845_v54, %v837_v53 }
 0xa29   :  { %2095 = vtanh.f32 %v2503_v55  ;;  %v2560_v39 = vsel %vm854_vm8, %v2503_v55, %v2500_v51 }
 0xa33   :  { %v2096_v56 = vpop.eup %2095 }
 0xa34   :  { %850 = vrot.lane.b32.xlu0 %v2096_v56, %s2174_s7 }
 0xa35   :  { %v923_v58 = vpop.permute.xlu1 %922 }
 0xa36   :  { %v2514_v59 = vadd.f32 %v923_v58, %v915_v57 }
 0xa38   :  { %2097 = vtanh.f32 %v2514_v59 }
 0xa42   :  { %v2098_v60 = vpop.eup %2097 }
 0xa43   :  { %928 = vrot.lane.b32.xlu1 %v2098_v60, %s2174_s7 }
 0xaa6   :  { %v851_v61 = vpop.permute.xlu0 %850 }
 0xaa7   :  { %v853_v62 = vmul.f32 %v2092_v44, %v851_v61  ;;  %v2571_v44 = vsel %vm932_vm9, %v2514_v59, %v2511_v52 }
 0xaa9   :  { %v2522_v63 = vsel %vm854_vm8, %v853_v62, %v2458_v14 }
 0xaaa   :  { %v938_v0 = vpack.c.bf16 %v2522_v63, %v2522_v63 }
 0xaac   :  { %940 = vrot.lane.b32.xlu0 %v938_v0, %s2175_s1 }
 0xab5   :  { %v929_v1 = vpop.permute.xlu1 %928 }
 0xab6   :  { %v931_v2 = vmul.f32 %v2094_v49, %v929_v1 }
 0xab8   :  { %v2531_v3 = vsel %vm932_vm9, %v931_v2, %v2467_v18 }
 0xab9   :  { %v1015_v4 = vpack.c.bf16 %v2531_v3, %v2531_v3 }
 0xabb   :  { %1017 = vrot.lane.b32.xlu1 %v1015_v4, %s2175_s1 }
 0xb1e   :  { %v941_v5 = vpop.permute.xlu0 %940 }
 0xb1f   :  { %1921 = vmatmul.mubr.msk.bf16.vlgmr.msra.gmra.mrb[20].mxu0 %vm89_vm0, %v941_v5 }
 0xb20   :  { %1933 = vmatpush3.bf16.msra.mxu0 %v2263_v10  ;;  %1936 = vmatprep.mubr.msk.bf16.mxu0 %vm2173_vm1, %v2172_v9 }
 0xb21   :  { %1934 = vmatprep.subr.bf16.mxu0 %v2172_v9 }
 0xb24   :  { %1935 = vmatpush3.bf16.msra.mxu0 %v2272_v11 }
 0xb25   :  { %1948 = vmatprep.subr.bf16.mxu0 %v2172_v9 }
 0xb2d   :  { %v1018_v6 = vpop.permute.xlu1 %1017 }
 0xb2e   :  { %1929 = vmatmul.mubr.msk.bf16.vlgmr.msra.gmra.mrb[28].mxu1 %vm89_vm0, %v1018_v6 }
 0xb2f   :  { %1941 = vmatpush3.bf16.msra.mxu1 %v2282_v12  ;;  %1944 = vmatprep.mubr.msk.bf16.mxu1 %vm2173_vm1, %v2172_v9 }
 0xb30   :  { %1942 = vmatprep.subr.bf16.mxu1 %v2172_v9 }
 0xb33   :  { %1943 = vmatpush3.bf16.msra.mxu1 %v2291_v13 }
 0xb34   :  { %1956 = vmatprep.subr.bf16.mxu1 %v2172_v9 }
 0xbf2   :  { %v979_v8 = vpop.f32.mrb[20].mxu0 }
 0xbf3   :  { %v985_v14 = vadd.f32 %v979_v8, %v937_v7  ;;  %v1922_v15 = vpop.f32.mrb[21].mxu0 }
 0xbf4   :  { %v982_v16 = vpop.f32.mrb[22].mxu0 }
 0xbf5   :  { %2099 = vtanh.f32 %v985_v14  ;;  %v1923_v17 = vpop.f32.mrb[23].mxu0  ;;  %v1695_v22 = vmul.f32 -1.442695, %v985_v14 }
 0xbff   :  { %v2100_v18 = vpop.eup %2099 }
 0xc00   :  { %995 = vrot.lane.b32.xlu0 %v2100_v18, %s2174_s7 }
 0xc01   :  { %v1056_v20 = vpop.f32.mrb[28].mxu1 }
 0xc02   :  { %v1062_v21 = vadd.f32 %v1056_v20, %v1014_v19  ;;  %v1930_v23 = vpop.f32.mrb[29].mxu1 }
 0xc03   :  { %v1059_v24 = vpop.f32.mrb[30].mxu1 }
 0xc04   :  { %2101 = vtanh.f32 %v1062_v21  ;;  %v1931_v25 = vpop.f32.mrb[31].mxu1  ;;  %v1697_v28 = vmul.f32 -1.442695, %v1062_v21 }
 0xc05   :  { %2103 = vpow2.f32 %v1695_v22 }
 0xc06   :  { %2105 = vpow2.f32 %v1697_v28 }
 0xc0e   :  { %v2102_v26 = vpop.eup %2101 }
 0xc0f   :  { %1072 = vrot.lane.b32.xlu1 %v2102_v26, %s2174_s7  ;;  %v2104_v27 = vpop.eup %2103 }
 0xc10   :  { %v989_v30 = vadd.f32 1.0, %v2104_v27  ;;  %v2106_v31 = vpop.eup %2105 }
 0xc11   :  { %v1066_v35 = vadd.f32 1.0, %v2106_v31 }
 0xc12   :  { %2107 = vrcp.f32 %v989_v30 }
 0xc13   :  { %2109 = vrcp.f32 %v1066_v35 }
 0xc1c   :  { %v2108_v32 = vpop.eup %2107 }
 0xc1d   :  { %v2110_v36 = vpop.eup %2109  ;;  %v993_v40 = vmul.f32 %v2108_v32, %v2560_v39 }
 0xc1e   :  { %v1070_v46 = vmul.f32 %v2110_v36, %v2571_v44 }
 0xc72   :  { %v996_v33 = vpop.permute.xlu0 %995 }
 0xc73   :  { %v998_v29 = vmul.f32 %v2108_v32, %v996_v33 }
 0xc75   :  { %1000 = vrot.lane.b32.xlu0 %v998_v29, %s2174_s7 }
 0xc81   :  { %v1073_v37 = vpop.permute.xlu1 %1072 }
 0xc82   :  { %v1075_v38 = vmul.f32 %v2110_v36, %v1073_v37 }
 0xc84   :  { %1077 = vrot.lane.b32.xlu1 %v1075_v38, %s2174_s7 }
 0xce7   :  { %v1001_v41 = vpop.permute.xlu0 %1000 }
 0xce8   :  { %v2563_v42 = vadd.f32 %v1001_v41, %v993_v40 }
 0xcea   :  { %2111 = vtanh.f32 %v2563_v42  ;;  %v2622_v25 = vsel %vm932_vm9, %v2563_v42, %v2560_v39 }
 0xcf4   :  { %v2112_v43 = vpop.eup %2111 }
 0xcf5   :  { %1006 = vrot.lane.b32.xlu0 %v2112_v43, %s2174_s7 }
 0xcf6   :  { %v1078_v47 = vpop.permute.xlu1 %1077 }
 0xcf7   :  { %v2574_v48 = vadd.f32 %v1078_v47, %v1070_v46  ;;  %v2168_v46 = vld [vmem:[%s2779_s3 + $0x8] sm:$0xff]  }
 0xcf9   :  { %2113 = vtanh.f32 %v2574_v48  ;;  %v2633_v30 = vsel %vm854_vm8, %v2574_v48, %v2571_v44  ;;  %v2167_v44 = vld [vmem:[%s2779_s3] sm:$0xff]  }
 0xcfa   :  { %v2169_v48 = vld [vmem:[%s2780_s6] sm:$0xff]  }
 0xd03   :  { %v2114_v49 = vpop.eup %2113 }
 0xd04   :  { %1083 = vrot.lane.b32.xlu1 %v2114_v49, %s2174_s7  ;;  %v2170_v49 = vld [vmem:[%s2780_s6 + $0x8] sm:$0xff]  }
 0xd67   :  { %v1007_v45 = vpop.permute.xlu0 %1006 }
 0xd68   :  { %v1009_v50 = vmul.f32 %v2108_v32, %v1007_v45 }
 0xd6a   :  { %v2581_v51 = vsel %vm932_vm9, %v1009_v50, %v2522_v63 }
 0xd6b   :  { %v1092_v53 = vpack.c.bf16 %v2581_v51, %v2581_v51 }
 0xd6d   :  { %1094 = vrot.lane.b32.xlu0 %v1092_v53, %s2175_s1 }
 0xd76   :  { %v1084_v54 = vpop.permute.xlu1 %1083 }
 0xd77   :  { %v1086_v55 = vmul.f32 %v2110_v36, %v1084_v54 }
 0xd79   :  { %v2589_v56 = vsel %vm854_vm8, %v1086_v55, %v2531_v3 }
 0xd7a   :  { %v1169_v52 = vpack.c.bf16 %v2589_v56, %v2589_v56 }
 0xd7c   :  { %1171 = vrot.lane.b32.xlu1 %v1169_v52, %s2175_s1 }
 0xddf   :  { %v1095_v57 = vpop.permute.xlu0 %1094 }
 0xde0   :  { %1937 = vmatmul.mubr.msk.bf16.vlgmr.msra.gmra.mrb[24].mxu0 %vm89_vm0, %v1095_v57 }
 0xde1   :  { %1949 = vmatpush3.bf16.msra.mxu0 %v2263_v10  ;;  %1952 = vmatprep.mubr.msk.bf16.mxu0 %vm2173_vm1, %v2172_v9  ;;  %v2608_v10 = vld [vmem:[#allocation2 + $0x14] sm:$0xff]  }
 0xde2   :  { %1950 = vmatprep.subr.bf16.mxu0 %v2172_v9  ;;  %v1245_v45 = vunpack.c.h.bf16 %v2608_v10 }
 0xde5   :  { %1951 = vmatpush3.bf16.msra.mxu0 %v2272_v11  ;;  %v1091_v11 = vunpack.c.l.bf16 %v2608_v10 }
 0xde6   :  { %1964 = vmatprep.subr.bf16.mxu0 %v2172_v9 }
 0xdee   :  { %v1172_v58 = vpop.permute.xlu1 %1171 }
 0xdef   :  { %1945 = vmatmul.mubr.msk.bf16.vlgmr.msra.gmra.mrb[32].mxu1 %vm89_vm0, %v1172_v58 }
 0xdf0   :  { %1957 = vmatpush3.bf16.msra.mxu1 %v2282_v12  ;;  %1960 = vmatprep.mubr.msk.bf16.mxu1 %vm2173_vm1, %v2172_v9  ;;  %v2611_v12 = vld [vmem:[#allocation3 + $0x4] sm:$0xff]  }
 0xdf1   :  { %1958 = vmatprep.subr.bf16.mxu1 %v2172_v9  ;;  %v1168_v1 = vunpack.c.h.bf16 %v2611_v12  ;;  %v1322_v52 = vunpack.c.l.bf16 %v2611_v12 }
 0xdf4   :  { %1959 = vmatpush3.bf16.msra.mxu1 %v2291_v13 }
 0xdf5   :  { %1972 = vmatprep.subr.bf16.mxu1 %v2172_v9 }
 0xeb3   :  { %v1133_v59 = vpop.f32.mrb[24].mxu0 }
 0xeb4   :  { %v1139_v60 = vadd.f32 %v1133_v59, %v1091_v11  ;;  %v1938_v61 = vpop.f32.mrb[25].mxu0 }
 0xeb5   :  { %v1136_v62 = vpop.f32.mrb[26].mxu0 }
 0xeb6   :  { %2115 = vtanh.f32 %v1139_v60  ;;  %v1939_v63 = vpop.f32.mrb[27].mxu0  ;;  %v1699_v7 = vmul.f32 -1.442695, %v1139_v60 }
 0xec0   :  { %v2116_v0 = vpop.eup %2115 }
 0xec1   :  { %1149 = vrot.lane.b32.xlu0 %v2116_v0, %s2174_s7 }
 0xec2   :  { %v1210_v13 = vpop.f32.mrb[32].mxu1 }
 0xec3   :  { %v1216_v2 = vadd.f32 %v1210_v13, %v1168_v1  ;;  %v1946_v3 = vpop.f32.mrb[33].mxu1 }
 0xec4   :  { %v1213_v4 = vpop.f32.mrb[34].mxu1 }
 0xec5   :  { %2117 = vtanh.f32 %v1216_v2  ;;  %v1947_v5 = vpop.f32.mrb[35].mxu1  ;;  %v1701_v14 = vmul.f32 -1.442695, %v1216_v2 }
 0xec6   :  { %2119 = vpow2.f32 %v1699_v7 }
 0xec7   :  { %2121 = vpow2.f32 %v1701_v14 }
 0xecf   :  { %v2118_v6 = vpop.eup %2117 }
 0xed0   :  { %1226 = vrot.lane.b32.xlu1 %v2118_v6, %s2174_s7  ;;  %v2120_v8 = vpop.eup %2119 }
 0xed1   :  { %v1143_v15 = vadd.f32 1.0, %v2120_v8  ;;  %v2122_v16 = vpop.eup %2121 }
 0xed2   :  { %v1220_v20 = vadd.f32 1.0, %v2122_v16 }
 0xed3   :  { %2123 = vrcp.f32 %v1143_v15 }
 0xed4   :  { %2125 = vrcp.f32 %v1220_v20 }
 0xedd   :  { %v2124_v17 = vpop.eup %2123 }
 0xede   :  { %v2126_v21 = vpop.eup %2125  ;;  %v1147_v26 = vmul.f32 %v2124_v17, %v2622_v25 }
 0xedf   :  { %v1224_v31 = vmul.f32 %v2126_v21, %v2633_v30 }
 0xf33   :  { %v1150_v18 = vpop.permute.xlu0 %1149 }
 0xf34   :  { %v1152_v19 = vmul.f32 %v2124_v17, %v1150_v18 }
 0xf36   :  { %1154 = vrot.lane.b32.xlu0 %v1152_v19, %s2174_s7 }
 0xf42   :  { %v1227_v23 = vpop.permute.xlu1 %1226 }
 0xf43   :  { %v1229_v24 = vmul.f32 %v2126_v21, %v1227_v23 }
 0xf45   :  { %1231 = vrot.lane.b32.xlu1 %v1229_v24, %s2174_s7 }
 0xfa8   :  { %v1155_v22 = vpop.permute.xlu0 %1154 }
 0xfa9   :  { %v2625_v27 = vadd.f32 %v1155_v22, %v1147_v26 }
 0xfab   :  { %2127 = vtanh.f32 %v2625_v27  ;;  %v2686_v7 = vsel %vm776_vm7, %v2625_v27, %v2622_v25 }
 0xfb5   :  { %v2128_v28 = vpop.eup %2127 }
 0xfb6   :  { %1160 = vrot.lane.b32.xlu0 %v2128_v28, %s2174_s7 }
 0xfb7   :  { %v1232_v32 = vpop.permute.xlu1 %1231 }
 0xfb8   :  { %v2636_v33 = vadd.f32 %v1232_v32, %v1224_v31 }
 0xfba   :  { %2129 = vtanh.f32 %v2636_v33 }
 0xfc4   :  { %v2130_v29 = vpop.eup %2129 }
 0xfc5   :  { %1237 = vrot.lane.b32.xlu1 %v2130_v29, %s2174_s7 }
0x1028   :  { %v1161_v35 = vpop.permute.xlu0 %1160 }
0x1029   :  { %v1163_v36 = vmul.f32 %v2124_v17, %v1161_v35  ;;  %v2697_v17 = vsel %vm698_vm6, %v2636_v33, %v2633_v30  ;;  %v1398_v33 = vld [vmem:[#allocation2 + $0x1c] sm:$0xf] }
0x102a   :  { %v1399_v29 = vunpack.c.l.bf16 %v1398_v33 }
0x102b   :  { %v2643_v37 = vsel %vm776_vm7, %v1163_v36, %v2581_v51 }
0x102c   :  { %v1246_v38 = vpack.c.bf16 %v2643_v37, %v2643_v37 }
0x102e   :  { %1248 = vrot.lane.b32.xlu0 %v1246_v38, %s2175_s1 }
0x1037   :  { %v1238_v39 = vpop.permute.xlu1 %1237 }
0x1038   :  { %v1240_v40 = vmul.f32 %v2126_v21, %v1238_v39 }
0x103a   :  { %v2651_v41 = vsel %vm698_vm6, %v1240_v40, %v2589_v56  ;;  %v1473_v40 = vld [vmem:[#allocation3] sm:$0xf] }
0x103b   :  { %v1323_v42 = vpack.c.bf16 %v2651_v41, %v2651_v41 }
0x103d   :  { %1325 = vrot.lane.b32.xlu1 %v1323_v42, %s2175_s1  ;;  %v1474_v42 = vunpack.c.l.bf16 %v1473_v40 }
0x10a0   :  { %v1249_v43 = vpop.permute.xlu0 %1248 }
0x10a1   :  { %1953 = vmatmul.mubr.msk.bf16.vlgmr.msra.gmra.mrb[28].mxu0 %vm89_vm0, %v1249_v43 }
0x10a2   :  { %1965 = vmatpush3.bf16.msra.mxu0 %v2167_v44  ;;  %1968 = vmatprep.mubr.msk.bf16.mxu0 %vm2173_vm1, %v2172_v9 }
0x10a3   :  { %1966 = vmatprep.subr.bf16.mxu0 %v2172_v9 }
0x10a6   :  { %1967 = vmatpush3.bf16.msra.mxu0 %v2168_v46 }
0x10af   :  { %v1326_v47 = vpop.permute.xlu1 %1325 }
0x10b0   :  { %1961 = vmatmul.mubr.msk.bf16.vlgmr.msra.gmra.mrb[36].mxu1 %vm89_vm0, %v1326_v47 }
0x10b1   :  { %1973 = vmatpush3.bf16.msra.mxu1 %v2169_v48  ;;  %1976 = vmatprep.mubr.msk.bf16.mxu1 %vm2173_vm1, %v2172_v9 }
0x10b2   :  { %1974 = vmatprep.subr.bf16.mxu1 %v2172_v9 }
0x10b5   :  { %1975 = vmatpush3.bf16.msra.mxu1 %v2170_v49 }
0x1174   :  { %v1287_v50 = vpop.f32.mrb[28].mxu0 }
0x1175   :  { %v1293_v51 = vadd.f32 %v1287_v50, %v1245_v45  ;;  %v1954_v53 = vpop.f32.mrb[29].mxu0 }
0x1176   :  { %v1290_v54 = vpop.f32.mrb[30].mxu0 }
0x1177   :  { %2131 = vtanh.f32 %v1293_v51  ;;  %v1955_v55 = vpop.f32.mrb[31].mxu0  ;;  %v1703_v10 = vmul.f32 -1.442695, %v1293_v51 }
0x1181   :  { %v2132_v56 = vpop.eup %2131 }
0x1182   :  { %1303 = vrot.lane.b32.xlu0 %v2132_v56, %s2174_s7 }
0x1183   :  { %v1364_v57 = vpop.f32.mrb[36].mxu1 }
0x1184   :  { %v1370_v58 = vadd.f32 %v1364_v57, %v1322_v52  ;;  %v1962_v11 = vpop.f32.mrb[37].mxu1 }
0x1185   :  { %v1367_v59 = vpop.f32.mrb[38].mxu1 }
0x1186   :  { %2133 = vtanh.f32 %v1370_v58  ;;  %v1963_v60 = vpop.f32.mrb[39].mxu1  ;;  %v1705_v63 = vmul.f32 -1.442695, %v1370_v58 }
0x1187   :  { %2135 = vpow2.f32 %v1703_v10 }
0x1188   :  { %2137 = vpow2.f32 %v1705_v63 }
0x1190   :  { %v2134_v61 = vpop.eup %2133 }
0x1191   :  { %1380 = vrot.lane.b32.xlu1 %v2134_v61, %s2174_s7  ;;  %v2136_v62 = vpop.eup %2135 }
0x1192   :  { %v1297_v0 = vadd.f32 1.0, %v2136_v62  ;;  %v2138_v1 = vpop.eup %2137 }
0x1193   :  { %v1374_v3 = vadd.f32 1.0, %v2138_v1 }
0x1194   :  { %2139 = vrcp.f32 %v1297_v0 }
0x1195   :  { %2141 = vrcp.f32 %v1374_v3  ;;  %v1558_v3 = vld [vmem:[%s2784_s8 + $0x8] sm:$0xff] }
0x119e   :  { %v2140_v13 = vpop.eup %2139 }
0x119f   :  { %v2142_v4 = vpop.eup %2141  ;;  %v1301_v8 = vmul.f32 %v2140_v13, %v2686_v7 }
0x11a0   :  { %v1378_v18 = vmul.f32 %v2142_v4, %v2697_v17 }
0x11f4   :  { %v1304_v2 = vpop.permute.xlu0 %1303 }
0x11f5   :  { %v1306_v12 = vmul.f32 %v2140_v13, %v1304_v2 }
0x11f7   :  { %1308 = vrot.lane.b32.xlu0 %v1306_v12, %s2174_s7  ;;  %v1557_v12 = vld [vmem:[%s2784_s8] sm:$0xff] }
0x1203   :  { %v1381_v5 = vpop.permute.xlu1 %1380 }
0x1204   :  { %v1383_v6 = vmul.f32 %v2142_v4, %v1381_v5  ;;  %v2176_v5 = vmov 0.0|0.0  }
0x1205   :  { %1999 = vmatprep.subr.bf16.mxu0 %v2176_v5 }
0x1206   :  { %1385 = vrot.lane.b32.xlu1 %v1383_v6, %s2174_s7  ;;  %v2000_v6 = vpack.c.bf16 %v1558_v3, %v1557_v12 }
0x1269   :  { %v1309_v14 = vpop.permute.xlu0 %1308 }
0x126a   :  { %v2689_v15 = vadd.f32 %v1309_v14, %v1301_v8  ;;  %v1561_v14 = vld [vmem:[%s2784_s8 + $0x20] sm:$0xff] }
0x126c   :  { %2143 = vtanh.f32 %v2689_v15  ;;  %v1319_v59 = vsel %vm620_vm5, %v2689_v15, %v2686_v7  ;;  %v1560_v7 = vld [vmem:[%s2784_s8 + $0x18] sm:$0xff]  ;;  %v1562_v15 = vld [vmem:[%s2784_s8 + $0x28] sm:$0xff] }
0x1276   :  { %v2144_v16 = vpop.eup %2143 }
0x1277   :  { %1314 = vrot.lane.b32.xlu0 %v2144_v16, %s2174_s7  ;;  %v2006_v16 = vpack.c.bf16 %v1562_v15, %v1561_v14 }
0x1278   :  { %v1386_v19 = vpop.permute.xlu1 %1385 }
0x1279   :  { %v2700_v20 = vadd.f32 %v1386_v19, %v1378_v18  ;;  %v1564_v18 = vld [vmem:[%s2784_s8 + $0x38] sm:$0xff] }
0x127b   :  { %2145 = vtanh.f32 %v2700_v20  ;;  %v1396_v63 = vsel %vm542_vm4, %v2700_v20, %v2697_v17  ;;  %v1563_v17 = vld [vmem:[%s2784_s8 + $0x30] sm:$0xff] }
0x1285   :  { %v2146_v21 = vpop.eup %2145 }
0x1286   :  { %1391 = vrot.lane.b32.xlu1 %v2146_v21, %s2174_s7  ;;  %v2009_v21 = vpack.c.bf16 %v1564_v18, %v1563_v17 }
0x12e9   :  { %v1315_v23 = vpop.permute.xlu0 %1314 }
0x12ea   :  { %v1317_v24 = vmul.f32 %v2140_v13, %v1315_v23 }
0x12ec   :  { %v2707_v25 = vsel %vm620_vm5, %v1317_v24, %v2643_v37  ;;  %v15_v24 = vstv %s2785_s9 }
0x12ed   :  { %v1400_v26 = vpack.c.bf16 %v2707_v25, %v2707_v25  ;;  %16 = vst [vmem:[#allocation4] sm:$0x1] %v15_v24 }
0x12ef   :  { %1402 = vrot.lane.b32.xlu0 %v1400_v26, %s2175_s1 }
0x12f8   :  { %v1392_v22 = vpop.permute.xlu1 %1391 }
0x12f9   :  { %v1394_v27 = vmul.f32 %v2142_v4, %v1392_v22  ;;  %v1559_v4 = vld [vmem:[%s2784_s8 + $0x10] sm:$0xff]  ;;  %s2177_s8 = smov 96  }
0x12fa   :  { %v2003_v8 = vpack.c.bf16 %v1560_v7, %v1559_v4 }
0x12fb   :  { %v2715_v28 = vsel %vm542_vm4, %v1394_v27, %v2651_v41 }
0x12fc   :  { %v1475_v30 = vpack.c.bf16 %v2715_v28, %v2715_v28 }
0x12fe   :  { %1477 = vrot.lane.b32.xlu1 %v1475_v30, %s2175_s1 }
0x1361   :  { %v1403_v31 = vpop.permute.xlu0 %1402 }
0x1362   :  { %1969 = vmatmul.mubr.msk.bf16.vlgmr.msra.gmra.mrb[32].mxu0 %vm89_vm0, %v1403_v31 }
0x1363   :  { %1996 = vmatprep.mubr.msk.f32.mxu0 %vm2173_vm1, %v2172_v9  ;;  %2001 = vmatpush3.bf16.msra.mxu0 %v2000_v6 }
0x1364   :  { %2002 = vmatprep.subr.bf16.mxu0 %v2176_v5 }
0x1367   :  { %2004 = vmatpush3.bf16.msra.mxu0 %v2003_v8 }
0x1368   :  { %2005 = vmatprep.subr.bf16.mxu0 %v2176_v5 }
0x136b   :  { %2007 = vmatpush3.bf16.msra.mxu0 %v2006_v16 }
0x136c   :  { %2008 = vmatprep.subr.bf16.mxu0 %v2176_v5 }
0x136f   :  { %2010 = vmatpush3.bf16.msra.mxu0 %v2009_v21 }
0x1370   :  { %v1478_v32 = vpop.permute.xlu1 %1477 }
0x1371   :  { %1977 = vmatmul.mubr.msk.bf16.vlgmr.msra.gmra.mrb[40].mxu1 %vm89_vm0, %v1478_v32  ;;  %v1710_v32 = vld [vmem:[#allocation4] ss:$0 sm:$0xff] }
0x1435   :  { %v1441_v35 = vpop.f32.mrb[32].mxu0 }
0x1436   :  { %v1447_v36 = vadd.f32 %v1441_v35, %v1399_v29  ;;  %v1970_v37 = vpop.f32.mrb[33].mxu0 }
0x1437   :  { %v1444_v38 = vpop.f32.mrb[34].mxu0 }
0x1438   :  { %2147 = vtanh.f32 %v1447_v36  ;;  %v1971_v39 = vpop.f32.mrb[35].mxu0  ;;  %v1707_v49 = vmul.f32 -1.442695, %v1447_v36 }
0x1442   :  { %v2148_v41 = vpop.eup %2147 }
0x1443   :  { %1457 = vrot.lane.b32.xlu0 %v2148_v41, %s2174_s7 }
0x1444   :  { %v1516_v43 = vpop.f32.mrb[40].mxu1 }
0x1445   :  { %v1522_v44 = vadd.f32 %v1516_v43, %v1474_v42  ;;  %v1978_v46 = vpop.f32.mrb[41].mxu1 }
0x1446   :  { %v1519_v9 = vpop.f32.mrb[42].mxu1 }
0x1447   :  { %2149 = vtanh.f32 %v1522_v44  ;;  %v1979_v47 = vpop.f32.mrb[43].mxu1  ;;  %v1709_v50 = vmul.f32 -1.442695, %v1522_v44 }
0x1448   :  { %2151 = vpow2.f32 %v1707_v49 }
0x1449   :  { %2153 = vpow2.f32 %v1709_v50 }
0x1451   :  { %v2150_v48 = vpop.eup %2149 }
0x1452   :  { %1532 = vrot.lane.b32.xlu1 %v2150_v48, %s2174_s7  ;;  %v2152_v45 = vpop.eup %2151 }
0x1453   :  { %v1451_v51 = vadd.f32 1.0, %v2152_v45  ;;  %v2154_v53 = vpop.eup %2153 }
0x1454   :  { %v1526_v52 = vadd.f32 1.0, %v2154_v53 }
0x1455   :  { %2155 = vrcp.f32 %v1451_v51 }
0x1456   :  { %2157 = vrcp.f32 %v1526_v52 }
0x145f   :  { %v2156_v54 = vpop.eup %2155 }
0x1460   :  { %v2158_v57 = vpop.eup %2157  ;;  %v1455_v60 = vmul.f32 %v2156_v54, %v1319_v59 }
0x1461   :  { %v1530_v0 = vmul.f32 %v2158_v57, %v1396_v63 }
0x14b5   :  { %v1458_v55 = vpop.permute.xlu0 %1457 }
0x14b6   :  { %v1460_v56 = vmul.f32 %v2156_v54, %v1458_v55 }
0x14b8   :  { %1462 = vrot.lane.b32.xlu0 %v1460_v56, %s2174_s7 }
0x14c4   :  { %v1533_v58 = vpop.permute.xlu1 %1532 }
0x14c5   :  { %v1535_v11 = vmul.f32 %v2158_v57, %v1533_v58 }
0x14c7   :  { %1537 = vrot.lane.b32.xlu1 %v1535_v11, %s2174_s7 }
0x152a   :  { %v1463_v61 = vpop.permute.xlu0 %1462 }
0x152b   :  { %v1465_v10 = vadd.f32 %v1463_v61, %v1455_v60 }
0x152d   :  { %2159 = vtanh.f32 %v1465_v10 }
0x1537   :  { %v2160_v62 = vpop.eup %2159 }
0x1538   :  { %1468 = vrot.lane.b32.xlu0 %v2160_v62, %s2174_s7 }
0x1539   :  { %v1538_v1 = vpop.permute.xlu1 %1537 }
0x153a   :  { %v1540_v13 = vadd.f32 %v1538_v1, %v1530_v0 }
0x153c   :  { %2161 = vtanh.f32 %v1540_v13 }
0x1546   :  { %v2162_v2 = vpop.eup %2161 }
0x1547   :  { %1543 = vrot.lane.b32.xlu1 %v2162_v2, %s2174_s7 }
0x15aa   :  { %v1469_v19 = vpop.permute.xlu0 %1468 }
0x15ab   :  { %v1471_v20 = vmul.f32 %v2156_v54, %v1469_v19 }
0x15ad   :  { %v1472_v23 = vsel %vm464_vm3, %v1471_v20, %v2707_v25 }
0x15ae   :  { %1549 = vrot.lane.b32.xlu0 %v1472_v23, %s2175_s1 }
0x15b9   :  { %v1544_v26 = vpop.permute.xlu1 %1543 }
0x15ba   :  { %v1546_v22 = vmul.f32 %v2158_v57, %v1544_v26 }
0x15bc   :  { %v1547_v27 = vsel %vm381_vm2, %v1546_v22, %v2715_v28 }
0x15bd   :  { %1553 = vrot.lane.b32.xlu1 %v1547_v27, %s2177_s8 }
0x1620   :  { %v1550_v30 = vpop.permute.xlu0 %1549 }
0x162f   :  { %v1554_v31 = vpop.permute.xlu1 %1553 }
0x1630   :  { %v1556_v25 = vsel %vm89_vm0, %v1550_v30, %v1554_v31 }
0x1631   :  { %1997 = vmatmul.mubr.msk.f32.vlgmr.msra.gmra.mrb[36].mxu0 %vm1572_vm10, %v1556_v25 }
0x1704   :  { %v1642_v33 = vpop.f32.mrb[36].mxu0 }
0x1705   :  { %v1643_v29 = vadd.f32 %v1710_v32, %v1642_v33  ;;  %v1998_v35 = vpop.f32.mrb[37].mxu0 }
0x1707   :  { %v1712_v36 = vmul.f32 -1.442695, %v1643_v29 }
0x1709   :  { %2163 = vpow2.f32 %v1712_v36 }
0x1713   :  { %v2164_v37 = vpop.eup %2163 }
0x1714   :  { %v1649_v38 = vadd.f32 1.0, %v2164_v37 }
0x1716   :  { %2165 = vrcp.f32 %v1649_v38 }
0x1720   :  { %v2166_v34 = vpop.eup %2165 }
0x1721   :  { %1653 = vst.msk [vmem:[%s2786_s10] sm:$0xff] %vm1652_vm11, %v2166_v34 }

</bundles_post_ra>
